<compile_context>
chip_gen: v5e
topology: v5e:2x2
jax: 0.10.0
libtpu: 0.0.40
codegen_flags: <defaults>
</compile_context>

<pallas_src>
import jax
import jax.numpy as jnp
from jax.experimental import pallas as pl
from jax.experimental.pallas import tpu as pltpu

# ----------------------------- small BERT config ------------------------------
VOCAB = 100
TYPE_VOCAB = 2
MAX_POS = 16
HIDDEN = 32
N_HEADS = 2
HEAD_DIM = HIDDEN // N_HEADS
INTERMEDIATE = 64
N_LAYERS = 2
NUM_LABELS = 2
LN_EPS = 1e-12

BATCH = 2
SEQ = 8
ROWS = BATCH * SEQ

MXU_DTYPE = jnp.bfloat16  # bf16 MXU operands (v6e/v7x-native), f32 accumulation.


# ------------------------------ in-kernel helpers ------------------------------
def _mm(a, b):
    """MXU matmul: bf16 operands, f32 accumulate."""
    return jnp.dot(a.astype(MXU_DTYPE), b.astype(MXU_DTYPE),
                   preferred_element_type=jnp.float32)


def _mm_nt(a, b):
    """a @ b.T (contract last dims) without materializing a transpose."""
    return jax.lax.dot_general(a.astype(MXU_DTYPE), b.astype(MXU_DTYPE),
                               (((1,), (1,)), ((), ())),
                               preferred_element_type=jnp.float32)


def _gelu_tanh(x):
    # TODO(synk): HF BERT uses exact erf-GELU; tanh approximation used for TPU EUP.
    c = 0.7978845608028654  # sqrt(2/pi)
    return 0.5 * x * (1.0 + jnp.tanh(c * (x + 0.044715 * x * x * x)))


def _layernorm(x, g, b):
    mu = jnp.mean(x, axis=-1, keepdims=True)
    var = jnp.mean((x - mu) * (x - mu), axis=-1, keepdims=True)
    return (x - mu) * jax.lax.rsqrt(var + LN_EPS) * g + b


# --------------------------------- fused kernel --------------------------------
def fused_bert_kernel(
        # shared (bcast across layer grid)
        emb_ref, eg_ref, eb_ref,
        pw_ref, pb_ref, cw_ref, cb_ref, lab_ref,
        # per-layer (stacked along leading axis, sliced by the grid)
        wqkv_ref, bqkv_ref, wo_ref, bo_ref, g1_ref, be1_ref,
        w1_ref, bf1_ref, w2_ref, bf2_ref, g2_ref, be2_ref,
        # outputs
        logits_ref, loss_ref,
        # scratch: hidden state, resident in VMEM across all layer steps
        h_ref):
    layer = pl.program_id(0)

    # Embedding LayerNorm once, before layer 0.
    @pl.when(layer == 0)
    def _():
        h_ref[...] = _layernorm(emb_ref[...], eg_ref[...], eb_ref[...])

    x = h_ref[...]                                        # (ROWS, HIDDEN) f32

    # ---- self-attention: fused QKV projection (lane-dense 3*HIDDEN output) ----
    qkv = _mm(x, wqkv_ref[0]) + bqkv_ref[0]               # (ROWS, 3*HIDDEN) SSA

    # TODO(synk): no attention_mask applied (dense fixed-length batch).
    scale = 1.0 / (HEAD_DIM ** 0.5)
    ctx_rows = []
    for b in range(BATCH):                                # static unroll (tiny shapes)
        r0 = b * SEQ
        head_ctx = []
        for h in range(N_HEADS):
            c0 = h * HEAD_DIM                             # head-major, aligned offsets
            q = qkv[r0:r0 + SEQ, c0:c0 + HEAD_DIM]
            k = qkv[r0:r0 + SEQ, HIDDEN + c0:HIDDEN + c0 + HEAD_DIM]
            v = qkv[r0:r0 + SEQ, 2 * HIDDEN + c0:2 * HIDDEN + c0 + HEAD_DIM]
            s = _mm_nt(q, k) * scale                      # (SEQ, SEQ)
            m = jnp.max(s, axis=-1, keepdims=True)
            p = jnp.exp(s - m)
            p = p * pl.reciprocal(jnp.sum(p, axis=-1, keepdims=True), approx=False)
            head_ctx.append(_mm(p, v))                    # (SEQ, HEAD_DIM)
        ctx_rows.append(jnp.concatenate(head_ctx, axis=1))  # (SEQ, HIDDEN)
    ctx = jnp.concatenate(ctx_rows, axis=0)               # (ROWS, HIDDEN) SSA

    attn = _mm(ctx, wo_ref[0]) + bo_ref[0]
    x = _layernorm(x + attn, g1_ref[0], be1_ref[0])

    # ---- feed-forward ----
    hmid = _gelu_tanh(_mm(x, w1_ref[0]) + bf1_ref[0])     # (ROWS, INTERMEDIATE)
    ffn = _mm(hmid, w2_ref[0]) + bf2_ref[0]
    h_new = _layernorm(x + ffn, g2_ref[0], be2_ref[0])
    h_ref[...] = h_new

    # ---- fused classification head + loss on the final layer step ----
    @pl.when(layer == pl.num_programs(0) - 1)
    def _():
        # TODO(synk): classifier dropout omitted (eval-mode behavior).
        cls = jnp.concatenate(
            [h_new[b * SEQ:b * SEQ + 1, :] for b in range(BATCH)], axis=0)  # (B, H)
        pooled = jnp.tanh(_mm(cls, pw_ref[...]) + pb_ref[...])              # (B, H)
        logits = _mm(pooled, cw_ref[...]) + cb_ref[...]                     # (B, L)
        logits_ref[...] = logits

        m = jnp.max(logits, axis=-1, keepdims=True)
        sh = logits - m
        lse = jnp.log(jnp.sum(jnp.exp(sh), axis=-1, keepdims=True))
        logp = sh - lse
        onehot = (jax.lax.broadcasted_iota(jnp.int32, logits.shape, 1)
                  == lab_ref[...]).astype(jnp.float32)
        nll = -jnp.sum(onehot * logp, axis=-1, keepdims=True)               # (B, 1)
        loss_ref[...] = jnp.sum(nll, axis=0, keepdims=True) * (1.0 / BATCH)  # (1, 1)


# ------------------------------ Pallas wrapper ----------------------------------
def pallas_bert(params, emb2d, labels2d):
    shared = (emb2d, params["emb_ln_g"], params["emb_ln_b"],
              params["pool_w"], params["pool_b"],
              params["cls_w"], params["cls_b"], labels2d)
    layered = (params["wqkv"], params["bqkv"], params["wo"], params["bo"],
               params["ln1_g"], params["ln1_b"],
               params["w1"], params["b1"], params["w2"], params["b2"],
               params["ln2_g"], params["ln2_b"])

    def bcast_spec(x):   # same (whole-array) block at every layer step
        n = x.ndim
        return pl.BlockSpec(x.shape, lambda l, n=n: (0,) * n)

    def layer_spec(x):   # slice layer l along the leading (stacked) axis
        n = x.ndim
        return pl.BlockSpec((1,) + x.shape[1:], lambda l, n=n: (l,) + (0,) * (n - 1))

    logits, loss = pl.pallas_call(
        fused_bert_kernel,
        out_shape=(jax.ShapeDtypeStruct((BATCH, NUM_LABELS), jnp.float32),
                   jax.ShapeDtypeStruct((1, 1), jnp.float32)),
        grid=(N_LAYERS,),
        in_specs=[bcast_spec(x) for x in shared] + [layer_spec(x) for x in layered],
        out_specs=(pl.BlockSpec((BATCH, NUM_LABELS), lambda l: (0, 0)),
                   pl.BlockSpec((1, 1), lambda l: (0, 0))),
        scratch_shapes=[pltpu.VMEM((ROWS, HIDDEN), jnp.float32)],   # resident hidden
        compiler_params=pltpu.CompilerParams(
            dimension_semantics=("arbitrary",)),   # layers carry state -> sequential
    )(*shared, *layered)
    return loss[0, 0], logits


# --------------------------- parameter initialization ---------------------------
def init_params(key):
    # TODO(synk): pretrained 'bert-base-uncased' weights cannot be loaded in-script;
    # random-initialized toy config is used instead.
    def nrm(k, shape, dtype=jnp.float32):
        return (0.02 * jax.random.normal(k, shape, dtype=jnp.float32)).astype(dtype)

    keys = iter(jax.random.split(key, 64))
    L, H, I = N_LAYERS, HIDDEN, INTERMEDIATE
    W = MXU_DTYPE  # large matmul weights stored bf16 in HBM
    return {
        "word_emb": nrm(next(keys), (VOCAB, H)),
        "pos_emb": nrm(next(keys), (MAX_POS, H)),
        "type_emb": nrm(next(keys), (TYPE_VOCAB, H)),
        "emb_ln_g": jnp.ones((1, H), jnp.float32),
        "emb_ln_b": jnp.zeros((1, H), jnp.float32),
        # Per-layer params stacked along a leading layer axis.
        # wqkv columns: [Q | K | V], head-major within each block, so per-head slices
        # in the kernel are contiguous HEAD_DIM-lane reads at aligned offsets.
        "wqkv": nrm(next(keys), (L, H, 3 * H), W),
        "bqkv": jnp.zeros((L, 1, 3 * H), jnp.float32),
        "wo": nrm(next(keys), (L, H, H), W),
        "bo": jnp.zeros((L, 1, H), jnp.float32),
        "ln1_g": jnp.ones((L, 1, H), jnp.float32),
        "ln1_b": jnp.zeros((L, 1, H), jnp.float32),
        "w1": nrm(next(keys), (L, H, I), W),
        "b1": jnp.zeros((L, 1, I), jnp.float32),
        "w2": nrm(next(keys), (L, I, H), W),
        "b2": jnp.zeros((L, 1, H), jnp.float32),
        "ln2_g": jnp.ones((L, 1, H), jnp.float32),
        "ln2_b": jnp.zeros((L, 1, H), jnp.float32),
        "pool_w": nrm(next(keys), (H, H)),
        "pool_b": jnp.zeros((1, H), jnp.float32),
        "cls_w": nrm(next(keys), (H, NUM_LABELS)),
        "cls_b": jnp.zeros((1, NUM_LABELS), jnp.float32),
    }


# ---------------------------------- forward -------------------------------------
def bert_forward(params, text, labels):
    B, S = text.shape
    # Embedding gathers are glue / plain JAX.
    pos_ids = jnp.arange(S, dtype=jnp.int32)
    type_ids = jnp.zeros((B, S), jnp.int32)
    emb = (jnp.take(params["word_emb"], text, axis=0)
           + jnp.take(params["pos_emb"], pos_ids, axis=0)[None, :, :]
           + jnp.take(params["type_emb"], type_ids, axis=0))
    emb2d = emb.reshape(B * S, HIDDEN)
    labels2d = labels.reshape(B, 1).astype(jnp.int32)

    loss, logits = pallas_bert(params, emb2d, labels2d)   # single fused kernel
    return loss, logits


# ------------------------------------ main ---------------------------------------
if __name__ == "__main__":
    key = jax.random.PRNGKey(0)
    pkey, tkey, lkey = jax.random.split(key, 3)

    params = init_params(pkey)
    text = jax.random.randint(tkey, (BATCH, SEQ), 0, VOCAB, dtype=jnp.int32)
    label = jax.random.randint(lkey, (BATCH,), 0, NUM_LABELS, dtype=jnp.int32)

    loss, logits = jax.jit(bert_forward)(params, text, label)
    jax.block_until_ready((loss, logits))

    assert loss.shape == ()
    assert logits.shape == (BATCH, NUM_LABELS)
    print("KERNEL_OK")
</pallas_src>

<mosaic_0001>
module attributes {stable_mosaic.version = 11 : i64} {
  func.func @fused_bert_kernel(%arg0: i32, %arg1: memref<16x32xf32, #tpu.memory_space<vmem>>, %arg2: memref<1x32xf32, #tpu.memory_space<vmem>>, %arg3: memref<1x32xf32, #tpu.memory_space<vmem>>, %arg4: memref<32x32xf32, #tpu.memory_space<vmem>>, %arg5: memref<1x32xf32, #tpu.memory_space<vmem>>, %arg6: memref<32x2xf32, #tpu.memory_space<vmem>>, %arg7: memref<1x2xf32, #tpu.memory_space<vmem>>, %arg8: memref<2x1xi32, #tpu.memory_space<vmem>>, %arg9: memref<1x32x96xbf16, #tpu.memory_space<vmem>>, %arg10: memref<1x1x96xf32, #tpu.memory_space<vmem>>, %arg11: memref<1x32x32xbf16, #tpu.memory_space<vmem>>, %arg12: memref<1x1x32xf32, #tpu.memory_space<vmem>>, %arg13: memref<1x1x32xf32, #tpu.memory_space<vmem>>, %arg14: memref<1x1x32xf32, #tpu.memory_space<vmem>>, %arg15: memref<1x32x64xbf16, #tpu.memory_space<vmem>>, %arg16: memref<1x1x64xf32, #tpu.memory_space<vmem>>, %arg17: memref<1x64x32xbf16, #tpu.memory_space<vmem>>, %arg18: memref<1x1x32xf32, #tpu.memory_space<vmem>>, %arg19: memref<1x1x32xf32, #tpu.memory_space<vmem>>, %arg20: memref<1x1x32xf32, #tpu.memory_space<vmem>>, %arg21: memref<2x2xf32, #tpu.memory_space<vmem>>, %arg22: memref<1x1xf32, #tpu.memory_space<vmem>>, %arg23: memref<16x32xf32, #tpu.memory_space<vmem>>) attributes {dimension_semantics = [#tpu.dimension_semantics<arbitrary>], iteration_bounds = array<i64: 2>, scalar_prefetch = 0 : i64, scratch_operands = 1 : i64, tpu.core_type = #tpu.core_type<tc>, window_params = [{pipeline_mode = #tpu.pipeline_mode<synchronous>, transform_indices = @transform_0, window_bounds = array<i64: 16, 32>}, {pipeline_mode = #tpu.pipeline_mode<synchronous>, transform_indices = @transform_1, window_bounds = array<i64: 1, 32>}, {pipeline_mode = #tpu.pipeline_mode<synchronous>, transform_indices = @transform_2, window_bounds = array<i64: 1, 32>}, {pipeline_mode = #tpu.pipeline_mode<synchronous>, transform_indices = @transform_3, window_bounds = array<i64: 32, 32>}, {pipeline_mode = #tpu.pipeline_mode<synchronous>, transform_indices = @transform_4, window_bounds = array<i64: 1, 32>}, {pipeline_mode = #tpu.pipeline_mode<synchronous>, transform_indices = @transform_5, window_bounds = array<i64: 32, 2>}, {pipeline_mode = #tpu.pipeline_mode<synchronous>, transform_indices = @transform_6, window_bounds = array<i64: 1, 2>}, {pipeline_mode = #tpu.pipeline_mode<synchronous>, transform_indices = @transform_7, window_bounds = array<i64: 2, 1>}, {transform_indices = @transform_8, window_bounds = array<i64: 1, 32, 96>}, {transform_indices = @transform_9, window_bounds = array<i64: 1, 1, 96>}, {transform_indices = @transform_10, window_bounds = array<i64: 1, 32, 32>}, {transform_indices = @transform_11, window_bounds = array<i64: 1, 1, 32>}, {transform_indices = @transform_12, window_bounds = array<i64: 1, 1, 32>}, {transform_indices = @transform_13, window_bounds = array<i64: 1, 1, 32>}, {transform_indices = @transform_14, window_bounds = array<i64: 1, 32, 64>}, {transform_indices = @transform_15, window_bounds = array<i64: 1, 1, 64>}, {transform_indices = @transform_16, window_bounds = array<i64: 1, 64, 32>}, {transform_indices = @transform_17, window_bounds = array<i64: 1, 1, 32>}, {transform_indices = @transform_18, window_bounds = array<i64: 1, 1, 32>}, {transform_indices = @transform_19, window_bounds = array<i64: 1, 1, 32>}, {pipeline_mode = #tpu.pipeline_mode<synchronous>, transform_indices = @transform_20, window_bounds = array<i64: 2, 2>}, {pipeline_mode = #tpu.pipeline_mode<synchronous>, transform_indices = @transform_21, window_bounds = array<i64: 1, 1>}]} {
    %c0_i32 = arith.constant 0 : i32
    %0 = arith.cmpi eq, %arg0, %c0_i32 : i32
    %1 = arith.extui %0 : i1 to i32
    %c0_i32_0 = arith.constant 0 : i32
    %2 = arith.cmpi ne, %1, %c0_i32_0 : i32
    scf.if %2 {
      %c0_78 = arith.constant 0 : index
      %c0_79 = arith.constant 0 : index
      %198 = vector.load %arg1[%c0_78, %c0_79] : memref<16x32xf32, #tpu.memory_space<vmem>>, vector<16x32xf32>
      %c0_80 = arith.constant 0 : index
      %c0_81 = arith.constant 0 : index
      %199 = vector.load %arg2[%c0_80, %c0_81] : memref<1x32xf32, #tpu.memory_space<vmem>>, vector<1x32xf32>
      %c0_82 = arith.constant 0 : index
      %c0_83 = arith.constant 0 : index
      %200 = vector.load %arg3[%c0_82, %c0_83] : memref<1x32xf32, #tpu.memory_space<vmem>>, vector<1x32xf32>
      %cst_84 = arith.constant dense<0.000000e+00> : vector<16xf32>
      %201 = vector.multi_reduction <add>, %198, %cst_84 [1] : vector<16x32xf32> to vector<16xf32>
      %202 = vector.shape_cast %201 : vector<16xf32> to vector<16x1xf32>
      %cst_85 = arith.constant 3.200000e+01 : f32
      %203 = vector.broadcast %cst_85 : f32 to vector<16x1xf32>
      %204 = arith.divf %202, %203 : vector<16x1xf32>
      %205 = vector.broadcast %204 : vector<16x1xf32> to vector<16x32xf32>
      %206 = arith.subf %198, %205 : vector<16x32xf32>
      %207 = vector.broadcast %204 : vector<16x1xf32> to vector<16x32xf32>
      %208 = arith.subf %198, %207 : vector<16x32xf32>
      %209 = arith.mulf %206, %208 : vector<16x32xf32>
      %cst_86 = arith.constant dense<0.000000e+00> : vector<16xf32>
      %210 = vector.multi_reduction <add>, %209, %cst_86 [1] : vector<16x32xf32> to vector<16xf32>
      %211 = vector.shape_cast %210 : vector<16xf32> to vector<16x1xf32>
      %cst_87 = arith.constant 3.200000e+01 : f32
      %212 = vector.broadcast %cst_87 : f32 to vector<16x1xf32>
      %213 = arith.divf %211, %212 : vector<16x1xf32>
      %214 = vector.broadcast %204 : vector<16x1xf32> to vector<16x32xf32>
      %215 = arith.subf %198, %214 : vector<16x32xf32>
      %cst_88 = arith.constant 9.99999996E-13 : f32
      %216 = vector.broadcast %cst_88 : f32 to vector<16x1xf32>
      %217 = arith.addf %213, %216 : vector<16x1xf32>
      %218 = math.rsqrt %217 : vector<16x1xf32>
      %219 = vector.broadcast %218 : vector<16x1xf32> to vector<16x32xf32>
      %220 = arith.mulf %215, %219 : vector<16x32xf32>
      %221 = vector.broadcast %199 : vector<1x32xf32> to vector<16x32xf32>
      %222 = arith.mulf %220, %221 : vector<16x32xf32>
      %223 = vector.broadcast %200 : vector<1x32xf32> to vector<16x32xf32>
      %224 = arith.addf %222, %223 : vector<16x32xf32>
      %c0_89 = arith.constant 0 : index
      %c0_90 = arith.constant 0 : index
      %225 = vector.load %arg23[%c0_89, %c0_90] : memref<16x32xf32, #tpu.memory_space<vmem>>, vector<16x32xf32>
      tpu.vector_store %arg23[%c0_89, %c0_90], %224 {strides = array<i32>} : memref<16x32xf32, #tpu.memory_space<vmem>>, vector<16x32xf32>,
    } else {
    }
    %c0 = arith.constant 0 : index
    %c0_1 = arith.constant 0 : index
    %3 = vector.load %arg23[%c0, %c0_1] : memref<16x32xf32, #tpu.memory_space<vmem>>, vector<16x32xf32>
    %c0_2 = arith.constant 0 : index
    %c0_3 = arith.constant 0 : index
    %c0_4 = arith.constant 0 : index
    %4 = vector.load %arg9[%c0_2, %c0_3, %c0_4] : memref<1x32x96xbf16, #tpu.memory_space<vmem>>, vector<1x32x96xbf16>
    %5 = vector.shape_cast %4 : vector<1x32x96xbf16> to vector<32x96xbf16>
    %6 = arith.truncf %3 : vector<16x32xf32> to vector<16x32xbf16>
    %cst = arith.constant dense<0.000000e+00> : vector<16x96xf32>
    %7 = tpu.matmul %6, %5, %cst {dimension_numbers = #tpu.dot_dimension_numbers<[1], [0], [0], [1], [0, 0, 1, 1], [], []>} : vector<16x32xbf16>, vector<32x96xbf16>, vector<16x96xf32> -> vector<16x96xf32>
    %c0_5 = arith.constant 0 : index
    %c0_6 = arith.constant 0 : index
    %c0_7 = arith.constant 0 : index
    %8 = vector.load %arg10[%c0_5, %c0_6, %c0_7] : memref<1x1x96xf32, #tpu.memory_space<vmem>>, vector<1x1x96xf32>
    %9 = vector.shape_cast %8 : vector<1x1x96xf32> to vector<1x96xf32>
    %10 = vector.broadcast %9 : vector<1x96xf32> to vector<16x96xf32>
    %11 = arith.addf %7, %10 : vector<16x96xf32>
    %12 = vector.extract_strided_slice %11 {offsets = [0, 0], sizes = [8, 16], strides = [1, 1]} : vector<16x96xf32> to vector<8x16xf32>
    %13 = vector.extract_strided_slice %11 {offsets = [0, 32], sizes = [8, 16], strides = [1, 1]} : vector<16x96xf32> to vector<8x16xf32>
    %14 = vector.extract_strided_slice %11 {offsets = [0, 64], sizes = [8, 16], strides = [1, 1]} : vector<16x96xf32> to vector<8x16xf32>
    %15 = arith.truncf %12 : vector<8x16xf32> to vector<8x16xbf16>
    %16 = arith.truncf %13 : vector<8x16xf32> to vector<8x16xbf16>
    %cst_8 = arith.constant dense<0.000000e+00> : vector<8x8xf32>
    %17 = tpu.matmul %15, %16, %cst_8 {dimension_numbers = #tpu.dot_dimension_numbers<[1], [1], [0], [0], [0, 0, 1, 0], [], []>} : vector<8x16xbf16>, vector<8x16xbf16>, vector<8x8xf32> -> vector<8x8xf32>
    %cst_9 = arith.constant 2.500000e-01 : f32
    %18 = vector.broadcast %cst_9 : f32 to vector<8x8xf32>
    %19 = arith.mulf %17, %18 : vector<8x8xf32>
    %cst_10 = arith.constant dense<0xFF800000> : vector<8xf32>
    %20 = vector.multi_reduction <maximumf>, %19, %cst_10 [1] : vector<8x8xf32> to vector<8xf32>
    %21 = vector.shape_cast %20 : vector<8xf32> to vector<8x1xf32>
    %22 = vector.broadcast %21 : vector<8x1xf32> to vector<8x8xf32>
    %23 = arith.subf %19, %22 : vector<8x8xf32>
    %24 = math.exp %23 : vector<8x8xf32>
    %cst_11 = arith.constant dense<0.000000e+00> : vector<8xf32>
    %25 = vector.multi_reduction <add>, %24, %cst_11 [1] : vector<8x8xf32> to vector<8xf32>
    %26 = vector.shape_cast %25 : vector<8xf32> to vector<8x1xf32>
    %27 = tpu.reciprocal %26 : vector<8x1xf32> -> vector<8x1xf32>
    %28 = vector.broadcast %27 : vector<8x1xf32> to vector<8x8xf32>
    %29 = arith.mulf %24, %28 : vector<8x8xf32>
    %30 = arith.truncf %29 : vector<8x8xf32> to vector<8x8xbf16>
    %31 = arith.truncf %14 : vector<8x16xf32> to vector<8x16xbf16>
    %cst_12 = arith.constant dense<0.000000e+00> : vector<8x16xf32>
    %32 = tpu.matmul %30, %31, %cst_12 {dimension_numbers = #tpu.dot_dimension_numbers<[1], [0], [0], [1], [0, 0, 1, 1], [], []>} : vector<8x8xbf16>, vector<8x16xbf16>, vector<8x16xf32> -> vector<8x16xf32>
    %33 = vector.extract_strided_slice %11 {offsets = [0, 16], sizes = [8, 16], strides = [1, 1]} : vector<16x96xf32> to vector<8x16xf32>
    %34 = vector.extract_strided_slice %11 {offsets = [0, 48], sizes = [8, 16], strides = [1, 1]} : vector<16x96xf32> to vector<8x16xf32>
    %35 = vector.extract_strided_slice %11 {offsets = [0, 80], sizes = [8, 16], strides = [1, 1]} : vector<16x96xf32> to vector<8x16xf32>
    %36 = arith.truncf %33 : vector<8x16xf32> to vector<8x16xbf16>
    %37 = arith.truncf %34 : vector<8x16xf32> to vector<8x16xbf16>
    %cst_13 = arith.constant dense<0.000000e+00> : vector<8x8xf32>
    %38 = tpu.matmul %36, %37, %cst_13 {dimension_numbers = #tpu.dot_dimension_numbers<[1], [1], [0], [0], [0, 0, 1, 0], [], []>} : vector<8x16xbf16>, vector<8x16xbf16>, vector<8x8xf32> -> vector<8x8xf32>
    %cst_14 = arith.constant 2.500000e-01 : f32
    %39 = vector.broadcast %cst_14 : f32 to vector<8x8xf32>
    %40 = arith.mulf %38, %39 : vector<8x8xf32>
    %cst_15 = arith.constant dense<0xFF800000> : vector<8xf32>
    %41 = vector.multi_reduction <maximumf>, %40, %cst_15 [1] : vector<8x8xf32> to vector<8xf32>
    %42 = vector.shape_cast %41 : vector<8xf32> to vector<8x1xf32>
    %43 = vector.broadcast %42 : vector<8x1xf32> to vector<8x8xf32>
    %44 = arith.subf %40, %43 : vector<8x8xf32>
    %45 = math.exp %44 : vector<8x8xf32>
    %cst_16 = arith.constant dense<0.000000e+00> : vector<8xf32>
    %46 = vector.multi_reduction <add>, %45, %cst_16 [1] : vector<8x8xf32> to vector<8xf32>
    %47 = vector.shape_cast %46 : vector<8xf32> to vector<8x1xf32>
    %48 = tpu.reciprocal %47 : vector<8x1xf32> -> vector<8x1xf32>
    %49 = vector.broadcast %48 : vector<8x1xf32> to vector<8x8xf32>
    %50 = arith.mulf %45, %49 : vector<8x8xf32>
    %51 = arith.truncf %50 : vector<8x8xf32> to vector<8x8xbf16>
    %52 = arith.truncf %35 : vector<8x16xf32> to vector<8x16xbf16>
    %cst_17 = arith.constant dense<0.000000e+00> : vector<8x16xf32>
    %53 = tpu.matmul %51, %52, %cst_17 {dimension_numbers = #tpu.dot_dimension_numbers<[1], [0], [0], [1], [0, 0, 1, 1], [], []>} : vector<8x8xbf16>, vector<8x16xbf16>, vector<8x16xf32> -> vector<8x16xf32>
    %54 = tpu.concatenate %32, %53 in 1 : vector<8x16xf32>, vector<8x16xf32> -> vector<8x32xf32>
    %55 = vector.extract_strided_slice %11 {offsets = [8, 0], sizes = [8, 16], strides = [1, 1]} : vector<16x96xf32> to vector<8x16xf32>
    %56 = vector.extract_strided_slice %11 {offsets = [8, 32], sizes = [8, 16], strides = [1, 1]} : vector<16x96xf32> to vector<8x16xf32>
    %57 = vector.extract_strided_slice %11 {offsets = [8, 64], sizes = [8, 16], strides = [1, 1]} : vector<16x96xf32> to vector<8x16xf32>
    %58 = arith.truncf %55 : vector<8x16xf32> to vector<8x16xbf16>
    %59 = arith.truncf %56 : vector<8x16xf32> to vector<8x16xbf16>
    %cst_18 = arith.constant dense<0.000000e+00> : vector<8x8xf32>
    %60 = tpu.matmul %58, %59, %cst_18 {dimension_numbers = #tpu.dot_dimension_numbers<[1], [1], [0], [0], [0, 0, 1, 0], [], []>} : vector<8x16xbf16>, vector<8x16xbf16>, vector<8x8xf32> -> vector<8x8xf32>
    %cst_19 = arith.constant 2.500000e-01 : f32
    %61 = vector.broadcast %cst_19 : f32 to vector<8x8xf32>
    %62 = arith.mulf %60, %61 : vector<8x8xf32>
    %cst_20 = arith.constant dense<0xFF800000> : vector<8xf32>
    %63 = vector.multi_reduction <maximumf>, %62, %cst_20 [1] : vector<8x8xf32> to vector<8xf32>
    %64 = vector.shape_cast %63 : vector<8xf32> to vector<8x1xf32>
    %65 = vector.broadcast %64 : vector<8x1xf32> to vector<8x8xf32>
    %66 = arith.subf %62, %65 : vector<8x8xf32>
    %67 = math.exp %66 : vector<8x8xf32>
    %cst_21 = arith.constant dense<0.000000e+00> : vector<8xf32>
    %68 = vector.multi_reduction <add>, %67, %cst_21 [1] : vector<8x8xf32> to vector<8xf32>
    %69 = vector.shape_cast %68 : vector<8xf32> to vector<8x1xf32>
    %70 = tpu.reciprocal %69 : vector<8x1xf32> -> vector<8x1xf32>
    %71 = vector.broadcast %70 : vector<8x1xf32> to vector<8x8xf32>
    %72 = arith.mulf %67, %71 : vector<8x8xf32>
    %73 = arith.truncf %72 : vector<8x8xf32> to vector<8x8xbf16>
    %74 = arith.truncf %57 : vector<8x16xf32> to vector<8x16xbf16>
    %cst_22 = arith.constant dense<0.000000e+00> : vector<8x16xf32>
    %75 = tpu.matmul %73, %74, %cst_22 {dimension_numbers = #tpu.dot_dimension_numbers<[1], [0], [0], [1], [0, 0, 1, 1], [], []>} : vector<8x8xbf16>, vector<8x16xbf16>, vector<8x16xf32> -> vector<8x16xf32>
    %76 = vector.extract_strided_slice %11 {offsets = [8, 16], sizes = [8, 16], strides = [1, 1]} : vector<16x96xf32> to vector<8x16xf32>
    %77 = vector.extract_strided_slice %11 {offsets = [8, 48], sizes = [8, 16], strides = [1, 1]} : vector<16x96xf32> to vector<8x16xf32>
    %78 = vector.extract_strided_slice %11 {offsets = [8, 80], sizes = [8, 16], strides = [1, 1]} : vector<16x96xf32> to vector<8x16xf32>
    %79 = arith.truncf %76 : vector<8x16xf32> to vector<8x16xbf16>
    %80 = arith.truncf %77 : vector<8x16xf32> to vector<8x16xbf16>
    %cst_23 = arith.constant dense<0.000000e+00> : vector<8x8xf32>
    %81 = tpu.matmul %79, %80, %cst_23 {dimension_numbers = #tpu.dot_dimension_numbers<[1], [1], [0], [0], [0, 0, 1, 0], [], []>} : vector<8x16xbf16>, vector<8x16xbf16>, vector<8x8xf32> -> vector<8x8xf32>
    %cst_24 = arith.constant 2.500000e-01 : f32
    %82 = vector.broadcast %cst_24 : f32 to vector<8x8xf32>
    %83 = arith.mulf %81, %82 : vector<8x8xf32>
    %cst_25 = arith.constant dense<0xFF800000> : vector<8xf32>
    %84 = vector.multi_reduction <maximumf>, %83, %cst_25 [1] : vector<8x8xf32> to vector<8xf32>
    %85 = vector.shape_cast %84 : vector<8xf32> to vector<8x1xf32>
    %86 = vector.broadcast %85 : vector<8x1xf32> to vector<8x8xf32>
    %87 = arith.subf %83, %86 : vector<8x8xf32>
    %88 = math.exp %87 : vector<8x8xf32>
    %cst_26 = arith.constant dense<0.000000e+00> : vector<8xf32>
    %89 = vector.multi_reduction <add>, %88, %cst_26 [1] : vector<8x8xf32> to vector<8xf32>
    %90 = vector.shape_cast %89 : vector<8xf32> to vector<8x1xf32>
    %91 = tpu.reciprocal %90 : vector<8x1xf32> -> vector<8x1xf32>
    %92 = vector.broadcast %91 : vector<8x1xf32> to vector<8x8xf32>
    %93 = arith.mulf %88, %92 : vector<8x8xf32>
    %94 = arith.truncf %93 : vector<8x8xf32> to vector<8x8xbf16>
    %95 = arith.truncf %78 : vector<8x16xf32> to vector<8x16xbf16>
    %cst_27 = arith.constant dense<0.000000e+00> : vector<8x16xf32>
    %96 = tpu.matmul %94, %95, %cst_27 {dimension_numbers = #tpu.dot_dimension_numbers<[1], [0], [0], [1], [0, 0, 1, 1], [], []>} : vector<8x8xbf16>, vector<8x16xbf16>, vector<8x16xf32> -> vector<8x16xf32>
    %97 = tpu.concatenate %75, %96 in 1 : vector<8x16xf32>, vector<8x16xf32> -> vector<8x32xf32>
    %98 = tpu.concatenate %54, %97 in 0 : vector<8x32xf32>, vector<8x32xf32> -> vector<16x32xf32>
    %c0_28 = arith.constant 0 : index
    %c0_29 = arith.constant 0 : index
    %c0_30 = arith.constant 0 : index
    %99 = vector.load %arg11[%c0_28, %c0_29, %c0_30] : memref<1x32x32xbf16, #tpu.memory_space<vmem>>, vector<1x32x32xbf16>
    %100 = vector.shape_cast %99 : vector<1x32x32xbf16> to vector<32x32xbf16>
    %101 = arith.truncf %98 : vector<16x32xf32> to vector<16x32xbf16>
    %cst_31 = arith.constant dense<0.000000e+00> : vector<16x32xf32>
    %102 = tpu.matmul %101, %100, %cst_31 {dimension_numbers = #tpu.dot_dimension_numbers<[1], [0], [0], [1], [0, 0, 1, 1], [], []>} : vector<16x32xbf16>, vector<32x32xbf16>, vector<16x32xf32> -> vector<16x32xf32>
    %c0_32 = arith.constant 0 : index
    %c0_33 = arith.constant 0 : index
    %c0_34 = arith.constant 0 : index
    %103 = vector.load %arg12[%c0_32, %c0_33, %c0_34] : memref<1x1x32xf32, #tpu.memory_space<vmem>>, vector<1x1x32xf32>
    %104 = vector.shape_cast %103 : vector<1x1x32xf32> to vector<1x32xf32>
    %105 = vector.broadcast %104 : vector<1x32xf32> to vector<16x32xf32>
    %106 = arith.addf %102, %105 : vector<16x32xf32>
    %107 = arith.addf %3, %106 : vector<16x32xf32>
    %c0_35 = arith.constant 0 : index
    %c0_36 = arith.constant 0 : index
    %c0_37 = arith.constant 0 : index
    %108 = vector.load %arg13[%c0_35, %c0_36, %c0_37] : memref<1x1x32xf32, #tpu.memory_space<vmem>>, vector<1x1x32xf32>
    %109 = vector.shape_cast %108 : vector<1x1x32xf32> to vector<1x32xf32>
    %c0_38 = arith.constant 0 : index
    %c0_39 = arith.constant 0 : index
    %c0_40 = arith.constant 0 : index
    %110 = vector.load %arg14[%c0_38, %c0_39, %c0_40] : memref<1x1x32xf32, #tpu.memory_space<vmem>>, vector<1x1x32xf32>
    %111 = vector.shape_cast %110 : vector<1x1x32xf32> to vector<1x32xf32>
    %cst_41 = arith.constant dense<0.000000e+00> : vector<16xf32>
    %112 = vector.multi_reduction <add>, %107, %cst_41 [1] : vector<16x32xf32> to vector<16xf32>
    %113 = vector.shape_cast %112 : vector<16xf32> to vector<16x1xf32>
    %cst_42 = arith.constant 3.200000e+01 : f32
    %114 = vector.broadcast %cst_42 : f32 to vector<16x1xf32>
    %115 = arith.divf %113, %114 : vector<16x1xf32>
    %116 = vector.broadcast %115 : vector<16x1xf32> to vector<16x32xf32>
    %117 = arith.subf %107, %116 : vector<16x32xf32>
    %118 = vector.broadcast %115 : vector<16x1xf32> to vector<16x32xf32>
    %119 = arith.subf %107, %118 : vector<16x32xf32>
    %120 = arith.mulf %117, %119 : vector<16x32xf32>
    %cst_43 = arith.constant dense<0.000000e+00> : vector<16xf32>
    %121 = vector.multi_reduction <add>, %120, %cst_43 [1] : vector<16x32xf32> to vector<16xf32>
    %122 = vector.shape_cast %121 : vector<16xf32> to vector<16x1xf32>
    %cst_44 = arith.constant 3.200000e+01 : f32
    %123 = vector.broadcast %cst_44 : f32 to vector<16x1xf32>
    %124 = arith.divf %122, %123 : vector<16x1xf32>
    %125 = vector.broadcast %115 : vector<16x1xf32> to vector<16x32xf32>
    %126 = arith.subf %107, %125 : vector<16x32xf32>
    %cst_45 = arith.constant 9.99999996E-13 : f32
    %127 = vector.broadcast %cst_45 : f32 to vector<16x1xf32>
    %128 = arith.addf %124, %127 : vector<16x1xf32>
    %129 = math.rsqrt %128 : vector<16x1xf32>
    %130 = vector.broadcast %129 : vector<16x1xf32> to vector<16x32xf32>
    %131 = arith.mulf %126, %130 : vector<16x32xf32>
    %132 = vector.broadcast %109 : vector<1x32xf32> to vector<16x32xf32>
    %133 = arith.mulf %131, %132 : vector<16x32xf32>
    %134 = vector.broadcast %111 : vector<1x32xf32> to vector<16x32xf32>
    %135 = arith.addf %133, %134 : vector<16x32xf32>
    %c0_46 = arith.constant 0 : index
    %c0_47 = arith.constant 0 : index
    %c0_48 = arith.constant 0 : index
    %136 = vector.load %arg15[%c0_46, %c0_47, %c0_48] : memref<1x32x64xbf16, #tpu.memory_space<vmem>>, vector<1x32x64xbf16>
    %137 = vector.shape_cast %136 : vector<1x32x64xbf16> to vector<32x64xbf16>
    %138 = arith.truncf %135 : vector<16x32xf32> to vector<16x32xbf16>
    %cst_49 = arith.constant dense<0.000000e+00> : vector<16x64xf32>
    %139 = tpu.matmul %138, %137, %cst_49 {dimension_numbers = #tpu.dot_dimension_numbers<[1], [0], [0], [1], [0, 0, 1, 1], [], []>} : vector<16x32xbf16>, vector<32x64xbf16>, vector<16x64xf32> -> vector<16x64xf32>
    %c0_50 = arith.constant 0 : index
    %c0_51 = arith.constant 0 : index
    %c0_52 = arith.constant 0 : index
    %140 = vector.load %arg16[%c0_50, %c0_51, %c0_52] : memref<1x1x64xf32, #tpu.memory_space<vmem>>, vector<1x1x64xf32>
    %141 = vector.shape_cast %140 : vector<1x1x64xf32> to vector<1x64xf32>
    %142 = vector.broadcast %141 : vector<1x64xf32> to vector<16x64xf32>
    %143 = arith.addf %139, %142 : vector<16x64xf32>
    %cst_53 = arith.constant 5.000000e-01 : f32
    %144 = vector.broadcast %cst_53 : f32 to vector<16x64xf32>
    %145 = arith.mulf %144, %143 : vector<16x64xf32>
    %cst_54 = arith.constant 4.471500e-02 : f32
    %146 = vector.broadcast %cst_54 : f32 to vector<16x64xf32>
    %147 = arith.mulf %146, %143 : vector<16x64xf32>
    %148 = arith.mulf %147, %143 : vector<16x64xf32>
    %149 = arith.mulf %148, %143 : vector<16x64xf32>
    %150 = arith.addf %143, %149 : vector<16x64xf32>
    %cst_55 = arith.constant 0.797884583 : f32
    %151 = vector.broadcast %cst_55 : f32 to vector<16x64xf32>
    %152 = arith.mulf %151, %150 : vector<16x64xf32>
    %153 = math.tanh %152 : vector<16x64xf32>
    %cst_56 = arith.constant 1.000000e+00 : f32
    %154 = vector.broadcast %cst_56 : f32 to vector<16x64xf32>
    %155 = arith.addf %154, %153 : vector<16x64xf32>
    %156 = arith.mulf %145, %155 : vector<16x64xf32>
    %c0_57 = arith.constant 0 : index
    %c0_58 = arith.constant 0 : index
    %c0_59 = arith.constant 0 : index
    %157 = vector.load %arg17[%c0_57, %c0_58, %c0_59] : memref<1x64x32xbf16, #tpu.memory_space<vmem>>, vector<1x64x32xbf16>
    %158 = vector.shape_cast %157 : vector<1x64x32xbf16> to vector<64x32xbf16>
    %159 = arith.truncf %156 : vector<16x64xf32> to vector<16x64xbf16>
    %cst_60 = arith.constant dense<0.000000e+00> : vector<16x32xf32>
    %160 = tpu.matmul %159, %158, %cst_60 {dimension_numbers = #tpu.dot_dimension_numbers<[1], [0], [0], [1], [0, 0, 1, 1], [], []>} : vector<16x64xbf16>, vector<64x32xbf16>, vector<16x32xf32> -> vector<16x32xf32>
    %c0_61 = arith.constant 0 : index
    %c0_62 = arith.constant 0 : index
    %c0_63 = arith.constant 0 : index
    %161 = vector.load %arg18[%c0_61, %c0_62, %c0_63] : memref<1x1x32xf32, #tpu.memory_space<vmem>>, vector<1x1x32xf32>
    %162 = vector.shape_cast %161 : vector<1x1x32xf32> to vector<1x32xf32>
    %163 = vector.broadcast %162 : vector<1x32xf32> to vector<16x32xf32>
    %164 = arith.addf %160, %163 : vector<16x32xf32>
    %165 = arith.addf %135, %164 : vector<16x32xf32>
    %c0_64 = arith.constant 0 : index
    %c0_65 = arith.constant 0 : index
    %c0_66 = arith.constant 0 : index
    %166 = vector.load %arg19[%c0_64, %c0_65, %c0_66] : memref<1x1x32xf32, #tpu.memory_space<vmem>>, vector<1x1x32xf32>
    %167 = vector.shape_cast %166 : vector<1x1x32xf32> to vector<1x32xf32>
    %c0_67 = arith.constant 0 : index
    %c0_68 = arith.constant 0 : index
    %c0_69 = arith.constant 0 : index
    %168 = vector.load %arg20[%c0_67, %c0_68, %c0_69] : memref<1x1x32xf32, #tpu.memory_space<vmem>>, vector<1x1x32xf32>
    %169 = vector.shape_cast %168 : vector<1x1x32xf32> to vector<1x32xf32>
    %cst_70 = arith.constant dense<0.000000e+00> : vector<16xf32>
    %170 = vector.multi_reduction <add>, %165, %cst_70 [1] : vector<16x32xf32> to vector<16xf32>
    %171 = vector.shape_cast %170 : vector<16xf32> to vector<16x1xf32>
    %cst_71 = arith.constant 3.200000e+01 : f32
    %172 = vector.broadcast %cst_71 : f32 to vector<16x1xf32>
    %173 = arith.divf %171, %172 : vector<16x1xf32>
    %174 = vector.broadcast %173 : vector<16x1xf32> to vector<16x32xf32>
    %175 = arith.subf %165, %174 : vector<16x32xf32>
    %176 = vector.broadcast %173 : vector<16x1xf32> to vector<16x32xf32>
    %177 = arith.subf %165, %176 : vector<16x32xf32>
    %178 = arith.mulf %175, %177 : vector<16x32xf32>
    %cst_72 = arith.constant dense<0.000000e+00> : vector<16xf32>
    %179 = vector.multi_reduction <add>, %178, %cst_72 [1] : vector<16x32xf32> to vector<16xf32>
    %180 = vector.shape_cast %179 : vector<16xf32> to vector<16x1xf32>
    %cst_73 = arith.constant 3.200000e+01 : f32
    %181 = vector.broadcast %cst_73 : f32 to vector<16x1xf32>
    %182 = arith.divf %180, %181 : vector<16x1xf32>
    %183 = vector.broadcast %173 : vector<16x1xf32> to vector<16x32xf32>
    %184 = arith.subf %165, %183 : vector<16x32xf32>
    %cst_74 = arith.constant 9.99999996E-13 : f32
    %185 = vector.broadcast %cst_74 : f32 to vector<16x1xf32>
    %186 = arith.addf %182, %185 : vector<16x1xf32>
    %187 = math.rsqrt %186 : vector<16x1xf32>
    %188 = vector.broadcast %187 : vector<16x1xf32> to vector<16x32xf32>
    %189 = arith.mulf %184, %188 : vector<16x32xf32>
    %190 = vector.broadcast %167 : vector<1x32xf32> to vector<16x32xf32>
    %191 = arith.mulf %189, %190 : vector<16x32xf32>
    %192 = vector.broadcast %169 : vector<1x32xf32> to vector<16x32xf32>
    %193 = arith.addf %191, %192 : vector<16x32xf32>
    %c0_75 = arith.constant 0 : index
    %c0_76 = arith.constant 0 : index
    %194 = vector.load %arg23[%c0_75, %c0_76] : memref<16x32xf32, #tpu.memory_space<vmem>>, vector<16x32xf32>
    tpu.vector_store %arg23[%c0_75, %c0_76], %193 {strides = array<i32>} : memref<16x32xf32, #tpu.memory_space<vmem>>, vector<16x32xf32>,
    %c1_i32 = arith.constant 1 : i32
    %195 = arith.cmpi eq, %arg0, %c1_i32 : i32
    %196 = arith.extui %195 : i1 to i32
    %c0_i32_77 = arith.constant 0 : i32
    %197 = arith.cmpi ne, %196, %c0_i32_77 : i32
    scf.if %197 {
      %198 = vector.extract_strided_slice %193 {offsets = [0, 0], sizes = [1, 32], strides = [1, 1]} : vector<16x32xf32> to vector<1x32xf32>
      %199 = vector.extract_strided_slice %193 {offsets = [8, 0], sizes = [1, 32], strides = [1, 1]} : vector<16x32xf32> to vector<1x32xf32>
      %200 = tpu.concatenate %198, %199 in 0 : vector<1x32xf32>, vector<1x32xf32> -> vector<2x32xf32>
      %c0_78 = arith.constant 0 : index
      %c0_79 = arith.constant 0 : index
      %201 = vector.load %arg4[%c0_78, %c0_79] : memref<32x32xf32, #tpu.memory_space<vmem>>, vector<32x32xf32>
      %202 = arith.truncf %200 : vector<2x32xf32> to vector<2x32xbf16>
      %203 = arith.truncf %201 : vector<32x32xf32> to vector<32x32xbf16>
      %cst_80 = arith.constant dense<0.000000e+00> : vector<2x32xf32>
      %204 = tpu.matmul %202, %203, %cst_80 {dimension_numbers = #tpu.dot_dimension_numbers<[1], [0], [0], [1], [0, 0, 1, 1], [], []>} : vector<2x32xbf16>, vector<32x32xbf16>, vector<2x32xf32> -> vector<2x32xf32>
      %c0_81 = arith.constant 0 : index
      %c0_82 = arith.constant 0 : index
      %205 = vector.load %arg5[%c0_81, %c0_82] : memref<1x32xf32, #tpu.memory_space<vmem>>, vector<1x32xf32>
      %206 = vector.broadcast %205 : vector<1x32xf32> to vector<2x32xf32>
      %207 = arith.addf %204, %206 : vector<2x32xf32>
      %208 = math.tanh %207 : vector<2x32xf32>
      %c0_83 = arith.constant 0 : index
      %c0_84 = arith.constant 0 : index
      %209 = vector.load %arg6[%c0_83, %c0_84] : memref<32x2xf32, #tpu.memory_space<vmem>>, vector<32x2xf32>
      %210 = arith.truncf %208 : vector<2x32xf32> to vector<2x32xbf16>
      %211 = arith.truncf %209 : vector<32x2xf32> to vector<32x2xbf16>
      %cst_85 = arith.constant dense<0.000000e+00> : vector<2x2xf32>
      %212 = tpu.matmul %210, %211, %cst_85 {dimension_numbers = #tpu.dot_dimension_numbers<[1], [0], [0], [1], [0, 0, 1, 1], [], []>} : vector<2x32xbf16>, vector<32x2xbf16>, vector<2x2xf32> -> vector<2x2xf32>
      %c0_86 = arith.constant 0 : index
      %c0_87 = arith.constant 0 : index
      %213 = vector.load %arg7[%c0_86, %c0_87] : memref<1x2xf32, #tpu.memory_space<vmem>>, vector<1x2xf32>
      %214 = vector.broadcast %213 : vector<1x2xf32> to vector<2x2xf32>
      %215 = arith.addf %212, %214 : vector<2x2xf32>
      %c0_88 = arith.constant 0 : index
      %c0_89 = arith.constant 0 : index
      %216 = vector.load %arg21[%c0_88, %c0_89] : memref<2x2xf32, #tpu.memory_space<vmem>>, vector<2x2xf32>
      tpu.vector_store %arg21[%c0_88, %c0_89], %215 {strides = array<i32>} : memref<2x2xf32, #tpu.memory_space<vmem>>, vector<2x2xf32>,
      %cst_90 = arith.constant dense<0xFF800000> : vector<2xf32>
      %217 = vector.multi_reduction <maximumf>, %215, %cst_90 [1] : vector<2x2xf32> to vector<2xf32>
      %218 = vector.shape_cast %217 : vector<2xf32> to vector<2x1xf32>
      %219 = vector.broadcast %218 : vector<2x1xf32> to vector<2x2xf32>
      %220 = arith.subf %215, %219 : vector<2x2xf32>
      %221 = math.exp %220 : vector<2x2xf32>
      %cst_91 = arith.constant dense<0.000000e+00> : vector<2xf32>
      %222 = vector.multi_reduction <add>, %221, %cst_91 [1] : vector<2x2xf32> to vector<2xf32>
      %223 = vector.shape_cast %222 : vector<2xf32> to vector<2x1xf32>
      %224 = math.log %223 : vector<2x1xf32>
      %225 = vector.broadcast %224 : vector<2x1xf32> to vector<2x2xf32>
      %226 = arith.subf %220, %225 : vector<2x2xf32>
      %227 = tpu.iota {dimensions = array<i32: 1>} : vector<2x2xi32>
      %c0_92 = arith.constant 0 : index
      %c0_93 = arith.constant 0 : index
      %228 = vector.load %arg8[%c0_92, %c0_93] : memref<2x1xi32, #tpu.memory_space<vmem>>, vector<2x1xi32>
      %229 = vector.broadcast %228 : vector<2x1xi32> to vector<2x2xi32>
      %230 = arith.cmpi eq, %227, %229 : vector<2x2xi32>
      %231 = arith.extui %230 : vector<2x2xi1> to vector<2x2xi32>
      %232 = arith.sitofp %231 : vector<2x2xi32> to vector<2x2xf32>
      %233 = arith.mulf %232, %226 : vector<2x2xf32>
      %cst_94 = arith.constant dense<0.000000e+00> : vector<2xf32>
      %234 = vector.multi_reduction <add>, %233, %cst_94 [1] : vector<2x2xf32> to vector<2xf32>
      %235 = vector.shape_cast %234 : vector<2xf32> to vector<2x1xf32>
      %cst_95 = arith.constant 0.000000e+00 : f32
      %236 = vector.broadcast %cst_95 : f32 to vector<2x1xf32>
      %237 = arith.subf %236, %235 : vector<2x1xf32>
      %cst_96 = arith.constant dense<0.000000e+00> : vector<1xf32>
      %238 = vector.multi_reduction <add>, %237, %cst_96 [0] : vector<2x1xf32> to vector<1xf32>
      %239 = vector.shape_cast %238 : vector<1xf32> to vector<1x1xf32>
      %cst_97 = arith.constant 5.000000e-01 : f32
      %240 = vector.broadcast %cst_97 : f32 to vector<1x1xf32>
      %241 = arith.mulf %239, %240 : vector<1x1xf32>
      %c0_98 = arith.constant 0 : index
      %c0_99 = arith.constant 0 : index
      %242 = vector.load %arg22[%c0_98, %c0_99] : memref<1x1xf32, #tpu.memory_space<vmem>>, vector<1x1xf32>
      tpu.vector_store %arg22[%c0_98, %c0_99], %241 {strides = array<i32>} : memref<1x1xf32, #tpu.memory_space<vmem>>, vector<1x1xf32>,
    } else {
    }
    return
  }
  func.func @transform_0(%arg0: i32) -> (i32, i32) {
    %c0_i32 = arith.constant 0 : i32
    %c0_i32_0 = arith.constant 0 : i32
    %c0_i32_1 = arith.constant 0 : i32
    return %c0_i32, %c0_i32_0 : i32, i32
  }
  func.func @transform_1(%arg0: i32) -> (i32, i32) {
    %c0_i32 = arith.constant 0 : i32
    %c0_i32_0 = arith.constant 0 : i32
    %c0_i32_1 = arith.constant 0 : i32
    return %c0_i32, %c0_i32_0 : i32, i32
  }
  func.func @transform_2(%arg0: i32) -> (i32, i32) {
    %c0_i32 = arith.constant 0 : i32
    %c0_i32_0 = arith.constant 0 : i32
    %c0_i32_1 = arith.constant 0 : i32
    return %c0_i32, %c0_i32_0 : i32, i32
  }
  func.func @transform_3(%arg0: i32) -> (i32, i32) {
    %c0_i32 = arith.constant 0 : i32
    %c0_i32_0 = arith.constant 0 : i32
    %c0_i32_1 = arith.constant 0 : i32
    return %c0_i32, %c0_i32_0 : i32, i32
  }
  func.func @transform_4(%arg0: i32) -> (i32, i32) {
    %c0_i32 = arith.constant 0 : i32
    %c0_i32_0 = arith.constant 0 : i32
    %c0_i32_1 = arith.constant 0 : i32
    return %c0_i32, %c0_i32_0 : i32, i32
  }
  func.func @transform_5(%arg0: i32) -> (i32, i32) {
    %c0_i32 = arith.constant 0 : i32
    %c0_i32_0 = arith.constant 0 : i32
    %c0_i32_1 = arith.constant 0 : i32
    return %c0_i32, %c0_i32_0 : i32, i32
  }
  func.func @transform_6(%arg0: i32) -> (i32, i32) {
    %c0_i32 = arith.constant 0 : i32
    %c0_i32_0 = arith.constant 0 : i32
    %c0_i32_1 = arith.constant 0 : i32
    return %c0_i32, %c0_i32_0 : i32, i32
  }
  func.func @transform_7(%arg0: i32) -> (i32, i32) {
    %c0_i32 = arith.constant 0 : i32
    %c0_i32_0 = arith.constant 0 : i32
    %c0_i32_1 = arith.constant 0 : i32
    return %c0_i32, %c0_i32_0 : i32, i32
  }
  func.func @transform_8(%arg0: i32) -> (i32, i32, i32) {
    %c0_i32 = arith.constant 0 : i32
    %c0_i32_0 = arith.constant 0 : i32
    %c0_i32_1 = arith.constant 0 : i32
    return %arg0, %c0_i32, %c0_i32_0 : i32, i32, i32
  }
  func.func @transform_9(%arg0: i32) -> (i32, i32, i32) {
    %c0_i32 = arith.constant 0 : i32
    %c0_i32_0 = arith.constant 0 : i32
    %c0_i32_1 = arith.constant 0 : i32
    return %arg0, %c0_i32, %c0_i32_0 : i32, i32, i32
  }
  func.func @transform_10(%arg0: i32) -> (i32, i32, i32) {
    %c0_i32 = arith.constant 0 : i32
    %c0_i32_0 = arith.constant 0 : i32
    %c0_i32_1 = arith.constant 0 : i32
    return %arg0, %c0_i32, %c0_i32_0 : i32, i32, i32
  }
  func.func @transform_11(%arg0: i32) -> (i32, i32, i32) {
    %c0_i32 = arith.constant 0 : i32
    %c0_i32_0 = arith.constant 0 : i32
    %c0_i32_1 = arith.constant 0 : i32
    return %arg0, %c0_i32, %c0_i32_0 : i32, i32, i32
  }
  func.func @transform_12(%arg0: i32) -> (i32, i32, i32) {
    %c0_i32 = arith.constant 0 : i32
    %c0_i32_0 = arith.constant 0 : i32
    %c0_i32_1 = arith.constant 0 : i32
    return %arg0, %c0_i32, %c0_i32_0 : i32, i32, i32
  }
  func.func @transform_13(%arg0: i32) -> (i32, i32, i32) {
    %c0_i32 = arith.constant 0 : i32
    %c0_i32_0 = arith.constant 0 : i32
    %c0_i32_1 = arith.constant 0 : i32
    return %arg0, %c0_i32, %c0_i32_0 : i32, i32, i32
  }
  func.func @transform_14(%arg0: i32) -> (i32, i32, i32) {
    %c0_i32 = arith.constant 0 : i32
    %c0_i32_0 = arith.constant 0 : i32
    %c0_i32_1 = arith.constant 0 : i32
    return %arg0, %c0_i32, %c0_i32_0 : i32, i32, i32
  }
  func.func @transform_15(%arg0: i32) -> (i32, i32, i32) {
    %c0_i32 = arith.constant 0 : i32
    %c0_i32_0 = arith.constant 0 : i32
    %c0_i32_1 = arith.constant 0 : i32
    return %arg0, %c0_i32, %c0_i32_0 : i32, i32, i32
  }
  func.func @transform_16(%arg0: i32) -> (i32, i32, i32) {
    %c0_i32 = arith.constant 0 : i32
    %c0_i32_0 = arith.constant 0 : i32
    %c0_i32_1 = arith.constant 0 : i32
    return %arg0, %c0_i32, %c0_i32_0 : i32, i32, i32
  }
  func.func @transform_17(%arg0: i32) -> (i32, i32, i32) {
    %c0_i32 = arith.constant 0 : i32
    %c0_i32_0 = arith.constant 0 : i32
    %c0_i32_1 = arith.constant 0 : i32
    return %arg0, %c0_i32, %c0_i32_0 : i32, i32, i32
  }
  func.func @transform_18(%arg0: i32) -> (i32, i32, i32) {
    %c0_i32 = arith.constant 0 : i32
    %c0_i32_0 = arith.constant 0 : i32
    %c0_i32_1 = arith.constant 0 : i32
    return %arg0, %c0_i32, %c0_i32_0 : i32, i32, i32
  }
  func.func @transform_19(%arg0: i32) -> (i32, i32, i32) {
    %c0_i32 = arith.constant 0 : i32
    %c0_i32_0 = arith.constant 0 : i32
    %c0_i32_1 = arith.constant 0 : i32
    return %arg0, %c0_i32, %c0_i32_0 : i32, i32, i32
  }
  func.func @transform_20(%arg0: i32) -> (i32, i32) {
    %c0_i32 = arith.constant 0 : i32
    %c0_i32_0 = arith.constant 0 : i32
    %c0_i32_1 = arith.constant 0 : i32
    return %c0_i32, %c0_i32_0 : i32, i32
  }
  func.func @transform_21(%arg0: i32) -> (i32, i32) {
    %c0_i32 = arith.constant 0 : i32
    %c0_i32_0 = arith.constant 0 : i32
    %c0_i32_1 = arith.constant 0 : i32
    return %c0_i32, %c0_i32_0 : i32, i32
  }
}

</mosaic_0001>

<bundles_post_ra>
// kernel: bert_forward.1
= control target key start
LH: loop header
LB: loop body
LE: loop exit
PB: predicated region body
PF: predicated region fallthrough
CT: control target
= control target key end

     0   :  { %s2440_s0 = inlined_call_operand.vmem [shape: f32[16,32], index: 0, kind: input, shape index: {}]   ;;  %s2441_s1 = inlined_call_operand.vmem [shape: f32[1,32], index: 1, kind: input, shape index: {}]   ;;  %s2442_s2 = inlined_call_operand.vmem [shape: f32[1,32], index: 2, kind: input, shape index: {}]   ;;  %s2443_s3 = inlined_call_operand.vmem [shape: f32[32,32], index: 3, kind: input, shape index: {}]   ;;  %s2444_s4 = inlined_call_operand.vmem [shape: f32[1,32], index: 4, kind: input, shape index: {}]   ;;  %s2445_s5 = inlined_call_operand.vmem [shape: f32[32,2], index: 5, kind: input, shape index: {}]   ;;  %s2446_s6 = inlined_call_operand.vmem [shape: f32[1,2], index: 6, kind: input, shape index: {}]   ;;  %s2447_s7 = inlined_call_operand.vmem [shape: s32[2,1], index: 7, kind: input, shape index: {}]   ;;  %s2448_s8 = inlined_call_operand.vmem [shape: bf16[2,32,96], index: 8, kind: input, shape index: {}]   ;;  %s2449_s9 = inlined_call_operand.vmem [shape: f32[2,1,96], index: 9, kind: input, shape index: {}]   ;;  %s2450_s10 = inlined_call_operand.vmem [shape: bf16[2,32,32], index: 10, kind: input, shape index: {}]   ;;  %s2451_s11 = inlined_call_operand.vmem [shape: f32[2,1,32], index: 11, kind: input, shape index: {}]   ;;  %s2452_s12 = inlined_call_operand.vmem [shape: f32[2,1,32], index: 12, kind: input, shape index: {}]   ;;  %s2453_s13 = inlined_call_operand.vmem [shape: f32[2,1,32], index: 13, kind: input, shape index: {}]   ;;  %s2454_s14 = inlined_call_operand.vmem [shape: bf16[2,32,64], index: 14, kind: input, shape index: {}]   ;;  %s2455_s15 = inlined_call_operand.vmem [shape: f32[2,1,64], index: 15, kind: input, shape index: {}]   ;;  %s2456_s16 = inlined_call_operand.vmem [shape: bf16[2,64,32], index: 16, kind: input, shape index: {}]   ;;  %s2457_s17 = inlined_call_operand.vmem [shape: f32[2,1,32], index: 17, kind: input, shape index: {}]   ;;  %s2458_s18 = inlined_call_operand.vmem [shape: f32[2,1,32], index: 18, kind: input, shape index: {}]   ;;  %s2459_s19 = inlined_call_operand.vmem [shape: f32[2,1,32], index: 19, kind: input, shape index: {}]   ;;  %s2460_s20 = inlined_call_operand.hbm [shape: f32[2,2], index: 20, kind: output, shape index: {0}]   ;;  %s2461_s21 = inlined_call_operand.hbm [shape: f32[1,1], index: 21, kind: output, shape index: {1}]  }
   0x1   :  { %2466 = sst [smem:[#allocation10_spill]] %s2440_s0 }
   0x2   :  { %2467 = sst [smem:[#allocation11_spill]] %s2441_s1 }
   0x3   :  { %2468 = sst [smem:[#allocation12_spill]] %s2442_s2 }
   0x4   :  { %2469 = sst [smem:[#allocation13_spill]] %s2443_s3 }
   0x5   :  { %2470 = sst [smem:[#allocation14_spill]] %s2444_s4 }
   0x6   :  { %2471 = sst [smem:[#allocation15_spill]] %s2445_s5 }
   0x7   :  { %2472 = sst [smem:[#allocation16_spill]] %s2446_s6 }
   0x8   :  { %2473 = sst [smem:[#allocation17_spill]] %s2447_s7 }
   0x9   :  { %2474 = sst [smem:[#allocation18_spill]] %s2448_s8 }
   0xa   :  { %2475 = sst [smem:[#allocation19_spill]] %s2450_s10 }
   0xb   :  { %2476 = sst [smem:[#allocation20_spill]] %s2460_s20 }
   0xc   :  { %2477 = sst [smem:[#allocation21_spill]] %s2461_s21 }
   0xd   :  { %27 = vsyncpa [#allocation4], 0 }
   0xe   :  { %28 = vsyncpa [#allocation6], 0  ;;  %s2154_s2 = smov 0  }
   0xf LB: > { %2478 = sst [smem:[#allocation9_spill]] %s2030_s2  ;;  %s2160_s25 = sadd.s32 4294967295, %s2030_s2   ;;  %s2030_s2 = sphi %s2154_s2, %s34_s2  }
  0x10   : > { %p1781_p0 = scmp.ge.s32.totalorder %s2030_s2, 1  ;;  %p676_p1 = scmp.lt.s32.totalorder %s2030_s2, 3 }
  0x12   : > { %p677_p2 = pnand %p1781_p0, %p676_p1 }
  0x13   : > { %p770_p3 = scmp.lt.s32.totalorder (!%p677_p2), %s2160_s25, 1  ;;  %s2479_s8 = sld [smem:[#allocation18_spill]] (!%p677_p2) }
  0x14   : > { %680 = sbr.rel (%p677_p2) target bundleno = 2897 (0xb51), region = 100  ;;  %s2480_s10 = sld [smem:[#allocation19_spill]] (!%p677_p2) }
  0x15   : > { %p1790_p4 = scmp.ne.s32.totalorder (!%p677_p2), %s2160_s25, 0 }
  0x19   : > { %s2166_s26 = scalar_select %p770_p3, %s2160_s25, 1 }
  0x1a   : > { %s2481_s1 = sld [smem:[#allocation10_spill]] (!%p1790_p4) }
  0x1b   : > { %s1853_s27 = sshll.u32 %s2166_s26, 4  ;;  %s1856_s6 = sshll.u32 %s2166_s26, 5 }
  0x1c   : > { %s2176_s30 = scalar_lea.vmem %s2479_s8, %s1853_s27  ;;  %s2181_s23 = scalar_lea.vmem %s2480_s10, %s1853_s27 }
  0x1d   : > { %s2198_s8 = scalar_lea.vmem %s2454_s14, %s1853_s27  ;;  %s799_s10 = scalar_lea.vmem %s2455_s15, %s2166_s26 }
  0x1e   : > { %s2208_s2 = scalar_lea.vmem %s2456_s16, %s1856_s6  ;;  %s807_s3 = scalar_lea.vmem %s2457_s17, %s2166_s26 }
  0x1f   : > { %s810_s0 = scalar_lea.vmem %s2458_s18, %s2166_s26  ;;  %s813_s7 = scalar_lea.vmem %s2459_s19, %s2166_s26 }
  0x20   : > { %818 = sbr.rel (%p1790_p4) target bundleno = 315 (0x13b), region = 104  ;;  %s2482_s21 = sld [smem:[#allocation11_spill]] (!%p1790_p4) }
  0x21   : > { %s2483_s4 = sld [smem:[#allocation12_spill]] (!%p1790_p4) }
  0x25   : > { %v819_v0 = vld [vmem:[%s2481_s1] sm:$0xff]  ;;  %vm823_vm0 = vcmask 261120   ;;  %v820_v2 = vld [vmem:[%s2481_s1 + $0x8] sm:$0xff]  ;;  %v2032_v4 = vmov 32.0  }
  0x26   : > { %v824_v1 = vsel %vm823_vm0, %v819_v0, 0.0  ;;  %v827_v3 = vsel %vm823_vm0, %v820_v2, 0.0  ;;  %1901 = vrcp.f32 %v2032_v4  ;;  %v1899_v35 = vld [vmem:[%s2482_s21] ss:$0 sm:$0xff] }
  0x27   : > { %825 = vadd.xlane.f32.xlu0 %v824_v1  ;;  %v1900_v38 = vld [vmem:[%s2483_s4] ss:$0 sm:$0xff] }
  0x2c   : > { %v1902_v5 = vpop.eup %1901 }
  0x2d   : > { %v831_v6 = vmul.f32 32.0, %v1902_v5  ;;  %vm835_vm1 = vweird.f32 %v1902_v5 }
  0x2f   : > { %828 = vadd.xlane.f32.xlu0 %v827_v3  ;;  %v832_v7 = vsub.f32 1.0, %v831_v6 }
  0x31   : > { %v833_v8 = vmul.f32 %v1902_v5, %v832_v7 }
  0x33   : > { %v834_v9 = vadd.f32 %v1902_v5, %v833_v8 }
  0x35   : > { %v836_v10 = vsel %vm835_vm1, %v1902_v5, %v834_v9 }
  0x9a   : > { %v826_v11 = vpop.xlane.xlu0 %825 }
  0x9b   : > { %v837_v12 = vmul.f32 %v836_v10, %v826_v11 }
  0x9d   : > { %v839_v13 = vsub.f32 %v819_v0, %v837_v12 }
  0x9f   : > { %v841_v14 = vmul.f32 %v839_v13, %v839_v13 }
  0xa1   : > { %v843_v15 = vsel %vm823_vm0, %v841_v14, 0.0 }
  0xa2   : > { %844 = vadd.xlane.f32.xlu1 %v843_v15  ;;  %v829_v16 = vpop.xlane.xlu0 %828 }
  0xa3   : > { %v838_v17 = vmul.f32 %v836_v10, %v829_v16 }
  0xa5   : > { %v840_v18 = vsub.f32 %v820_v2, %v838_v17 }
  0xa7   : > { %v842_v19 = vmul.f32 %v840_v18, %v840_v18 }
  0xa9   : > { %v846_v20 = vsel %vm823_vm0, %v842_v19, 0.0 }
  0xaa   : > { %847 = vadd.xlane.f32.xlu1 %v846_v20 }
 0x115   : > { %v845_v21 = vpop.xlane.xlu1 %844 }
 0x116   : > { %v849_v22 = vmul.f32 %v845_v21, %v836_v10 }
 0x118   : > { %v851_v23 = vadd.f32 1e-12, %v849_v22 }
 0x11a   : > { %1903 = vrsqrt.f32 %v851_v23  ;;  %vm859_vm3 = vweird.f32 %v851_v23 }
 0x11d   : > { %v848_v24 = vpop.xlane.xlu1 %847 }
 0x11e   : > { %v850_v25 = vmul.f32 %v848_v24, %v836_v10 }
 0x120   : > { %v1904_v26 = vpop.eup %1903  ;;  %v852_v27 = vadd.f32 1e-12, %v850_v25 }
 0x121   : > { %v854_v28 = vmul.f32 %v1904_v26, %v851_v23  ;;  %vm860_vm2 = vweird.f32 %v1904_v26 }
 0x122   : > { %1905 = vrsqrt.f32 %v852_v27  ;;  %vm861_vm4 = vmor %vm859_vm3, %vm860_vm2  ;;  %vm869_vm6 = vweird.f32 %v852_v27 }
 0x123   : > { %v855_v29 = vmul.f32 %v1904_v26, %v854_v28 }
 0x125   : > { %v856_v30 = vmul.f32 0.5, %v855_v29 }
 0x127   : > { %v857_v31 = vsub.f32 1.5, %v856_v30 }
 0x128   : > { %v1906_v32 = vpop.eup %1905 }
 0x129   : > { %v858_v33 = vmul.f32 %v1904_v26, %v857_v31  ;;  %v864_v34 = vmul.f32 %v1906_v32, %v852_v27  ;;  %vm870_vm5 = vweird.f32 %v1906_v32 }
 0x12a   : > { %vm871_vm7 = vmor %vm869_vm6, %vm870_vm5 }
 0x12b   : > { %v862_v36 = vsel %vm861_vm4, %v1904_v26, %v858_v33  ;;  %v865_v37 = vmul.f32 %v1906_v32, %v864_v34 }
 0x12c   : > { %v873_v39 = vmul.f32 %v862_v36, %v839_v13 }
 0x12d   : > { %v866_v40 = vmul.f32 0.5, %v865_v37 }
 0x12e   : > { %v878_v41 = vmul.f32 %v1899_v35, %v873_v39 }
 0x12f   : > { %v867_v42 = vsub.f32 1.5, %v866_v40 }
 0x130   : > { %v883_v43 = vadd.f32 %v1900_v38, %v878_v41 }
 0x131   : > { %v868_v44 = vmul.f32 %v1906_v32, %v867_v42 }
 0x132   : > { %885 = vst.msk [vmem:[#allocation2] sm:$0xff] %vm823_vm0, %v883_v43 }
 0x133   : > { %v872_v45 = vsel %vm871_vm7, %v1906_v32, %v868_v44 }
 0x134   : > { %v874_v46 = vmul.f32 %v872_v45, %v840_v18 }
 0x136   : > { %v879_v47 = vmul.f32 %v1899_v35, %v874_v46 }
 0x138   : > { %v884_v48 = vadd.f32 %v1900_v38, %v879_v47 }
 0x13a   : > { %886 = vst.msk [vmem:[#allocation2 + $0x8] sm:$0xff] %vm823_vm0, %v884_v48 }
 0x13b PF: > { %v1858_v49 = vld [vmem:[%s2176_s30 + $0x8] sm:$0xff]  ;;  %v1857_v50 = vld [vmem:[%s2176_s30] sm:$0xff]  ;;  %vm910_vm8 = vcmask 261120   ;;  %s2484_s6 = scalar_lea.vmem %s2449_s9, %s2166_s26  ;;  %s2033_s30 = smov 112   ;;  %vm932_vm9 = vcmask 130048   ;;  %vm953_vm10 = vcmask 64512  }
 0x13c   : > { %v2243_v51 = vld [vmem:[#allocation2] sm:$0xff]  ;;  %920 = vmatpush.bf16.msra.mxu0 %v1858_v49  ;;  %s2034_s24 = smov 96   ;;  %s2035_s29 = smov 80   ;;  %vm984_vm11 = vcmask 1043456  }
 0x13d   : > { %v1912_v54 = vld [vmem:[%s2484_s6] ss:$0 sm:$0xff]  ;;  %s2036_s20 = smov 64   ;;  %s2037_s21 = smov 48  }
 0x13e   : > { %s2038_s28 = smov 16   ;;  %s2485_s5 = scalar_lea.vmem %s2451_s11, %s2166_s26 }
 0x13f   : > { %s2486_s22 = scalar_lea.vmem %s2452_s12, %s2166_s26  ;;  %p1843_p5 = scmp.ne.s32.totalorder %s2160_s25, 1 }
 0x140   : > { %921 = vmatpush.bf16.msra.mxu0 %v1857_v50  ;;  %s2492_s6 = sld [smem:[#allocation17_spill]] (!%p1843_p5) }
 0x141   : > { %v2245_v52 = vld [vmem:[#allocation2 + $0x8] sm:$0xff] }
 0x142   : > { %v893_v53 = vpack.c.bf16 %v2245_v52, %v2243_v51 }
 0x144   : > { %1799 = vmatmul.msk.bf16.vlgmr.msra.gmra.mxu0 %vm910_vm8, %v893_v53 }
 0x1c1   : > { %v923_v55 = vpop.f32.mrf.mxu0 }
 0x1c2   : > { %v924_v56 = vadd.f32 %v1912_v54, %v923_v55 }
 0x1c4   : > { %v2255_v57 = vpack.c.bf16 %v924_v56, %v924_v56 }
 0x1c6   : > { %1001 = vrot.lane.b32.xlu1 %v2255_v57, %s2033_s30  ;;  %930 = vrot.lane.b32.xlu0 %v2255_v57, %s2034_s24 }
 0x1c9   : > { %v925_v58 = vpop.f32.mrf.mxu0 }
 0x1ca   : > { %v926_v59 = vadd.f32 %v1912_v54, %v925_v58 }
 0x1cc   : > { %v2259_v60 = vpack.c.bf16 %v926_v59, %v926_v59 }
 0x1ce   : > { %1146 = vrot.lane.b32.xlu2 %v2259_v60, %s2033_s30  ;;  %1148 = vrot.lane.b32.xlu1 %v2259_v60, %s2035_s29 }
 0x1cf   : > { %1003 = vrot.lane.b32.xlu0 %v2255_v57, %s2035_s29  ;;  %s2489_s29 = sld [smem:[#allocation15_spill]] (!%p1843_p5) }
 0x1d6   : > { %1078 = vrot.lane.b32.xlu2 %v2259_v60, %s2034_s24  ;;  %s2487_s24 = scalar_lea.vmem %s2453_s13, %s2166_s26  ;;  %s2490_s26 = sld [smem:[#allocation14_spill]] (!%p1843_p5) }
 0x228   : > { %v1147_v61 = vpop.permute.xlu2 %1146 }
 0x230   : > { %v1079_v62 = vpop.permute.xlu2 %1078 }
 0x231   : > { %v1084_v63 = vsel %vm932_vm9, %v1079_v62, 0 }
 0x232   : > { %1093 = vmatpush.bf16.xpose.msrb.mxu0 %v1084_v63 }
 0x238   : > { %v1002_v0 = vpop.permute.xlu1 %1001  ;;  %v931_v1 = vpop.permute.xlu0 %930 }
 0x239   : > { %1804 = vmatmul.msk.bf16.vlgmr.msrb.gmra.mxu0 %vm932_vm9, %v2259_v60  ;;  %v937_v2 = vsel %vm932_vm9, %v931_v1, 0 }
 0x23a   : > { %946 = vmatpush.bf16.xpose.msra.mxu1 %v937_v2 }
 0x240   : > { %v1149_v3 = vpop.permute.xlu1 %1148 }
 0x241   : > { %v1004_v4 = vpop.permute.xlu0 %1003  ;;  %1800 = vmatmul.msk.bf16.vlgmr.msra.gmra.mxu1 %vm932_vm9, %v2255_v57  ;;  %v1154_v5 = vsel %vm932_vm9, %v1149_v3, 0 }
 0x242   : > { %v1009_v6 = vsel %vm932_vm9, %v1004_v4, 0 }
 0x243   : > { %1018 = vmatpush.bf16.xpose.msra.mxu3 %v1009_v6 }
 0x24a   : > { %1802 = vmatmul.msk.bf16.vlgmr.msra.gmra.mxu3 %vm932_vm9, %v1002_v0 }
 0x24b   : > { %1163 = vmatpush.bf16.xpose.msrb.mxu3 %v1154_v5 }
 0x25a   : > { %1806 = vmatmul.msk.bf16.vlgmr.msrb.gmra.mxu3 %vm932_vm9, %v1147_v61 }
 0x2b6   : > { %v1095_v7 = vpop.f32.mrf.mxu0 }
 0x2b7   : > { %v1099_v20 = vmul.f32 0.25, %v1095_v7 }
 0x2b9   : > { %v1100_v22 = vsel %vm953_vm10, %v1099_v20, -inf }
 0x2be   : > { %v948_v8 = vpop.f32.mrf.mxu1  ;;  %v1097_v9 = vpop.f32.mrf.mxu0 }
 0x2bf   : > { %v952_v10 = vmul.f32 0.25, %v948_v8 }
 0x2c1   : > { %v954_v11 = vsel %vm953_vm10, %v952_v10, -inf }
 0x2c2   : > { %955 = vmax.xlane.f32.xlu0 %v954_v11 }
 0x2c6   : > { %v950_v12 = vpop.f32.mrf.mxu1 }
 0x2cd   : > { %v1020_v13 = vpop.f32.mrf.mxu3 }
 0x2ce   : > { %v1024_v14 = vmul.f32 0.25, %v1020_v13 }
 0x2d0   : > { %v1025_v15 = vsel %vm953_vm10, %v1024_v14, -inf }
 0x2d1   : > { %1026 = vmax.xlane.f32.xlu1 %v1025_v15 }
 0x2d5   : > { %v1022_v16 = vpop.f32.mrf.mxu3 }
 0x2dd   : > { %v1165_v17 = vpop.f32.mrf.mxu3 }
 0x2de   : > { %v1169_v18 = vmul.f32 0.25, %v1165_v17 }
 0x2e0   : > { %v1170_v19 = vsel %vm953_vm10, %v1169_v18, -inf }
 0x2e1   : > { %1171 = vmax.xlane.f32.xlu2 %v1170_v19 }
 0x2e5   : > { %v1167_v21 = vpop.f32.mrf.mxu3 }
 0x2e9   : > { %1101 = vmax.xlane.f32.xlu2 %v1100_v22 }
 0x2ea   : > { %979 = vrot.lane.b32.xlu1 %v2255_v57, %s2036_s20 }
 0x335   : > { %v956_v23 = vpop.xlane.xlu0 %955 }
 0x336   : > { %v957_v24 = vsub.f32 %v952_v10, %v956_v23 }
 0x338   : > { %v958_v25 = vmul.f32 1.442695, %v957_v24 }
 0x33a   : > { %1920 = vpow2.f32 %v958_v25 }
 0x340   : > { %v1921_v26 = vpop.eup %1920 }
 0x341   : > { %v960_v27 = vsel %vm953_vm10, %v1921_v26, 0.0 }
 0x342   : > { %961 = vadd.xlane.f32.xlu2 %v960_v27 }
 0x344   : > { %v1027_v28 = vpop.xlane.xlu1 %1026 }
 0x345   : > { %v1028_v29 = vsub.f32 %v1024_v14, %v1027_v28 }
 0x347   : > { %v1029_v30 = vmul.f32 1.442695, %v1028_v29 }
 0x349   : > { %1922 = vpow2.f32 %v1029_v30 }
 0x34f   : > { %v2282_v31 = vpop.eup %1922 }
 0x350   : > { %v1031_v32 = vsel %vm953_vm10, %v2282_v31, 0.0 }
 0x351   : > { %1032 = vadd.xlane.f32.xlu0 %v1031_v32 }
 0x354   : > { %v1172_v33 = vpop.xlane.xlu2 %1171 }
 0x355   : > { %v1173_v34 = vsub.f32 %v1169_v18, %v1172_v33 }
 0x357   : > { %v1174_v35 = vmul.f32 1.442695, %v1173_v34 }
 0x359   : > { %1924 = vpow2.f32 %v1174_v35 }
 0x35a   : > { %1050 = vrot.lane.b32.xlu2 %v2255_v57, %s2037_s21 }
 0x35c   : > { %v980_v36 = vpop.permute.xlu1 %979  ;;  %v1102_v37 = vpop.xlane.xlu2 %1101 }
 0x35d   : > { %v1103_v38 = vsub.f32 %v1099_v20, %v1102_v37  ;;  %v986_v39 = vsel %vm984_vm11, %v980_v36, 0 }
 0x35e   : > { %995 = vmatpush.bf16.msra.mxu2 %v986_v39 }
 0x35f   : > { %v2288_v40 = vpop.eup %1924  ;;  %v1104_v41 = vmul.f32 1.442695, %v1103_v38 }
 0x360   : > { %v1176_v42 = vsel %vm953_vm10, %v2288_v40, 0.0 }
 0x361   : > { %1926 = vpow2.f32 %v1104_v41  ;;  %1177 = vadd.xlane.f32.xlu0 %v1176_v42 }
 0x367   : > { %v2292_v43 = vpop.eup %1926 }
 0x368   : > { %v1106_v44 = vsel %vm953_vm10, %v2292_v43, 0.0 }
 0x369   : > { %1107 = vadd.xlane.f32.xlu1 %v1106_v44  ;;  %v1860_v44 = vld [vmem:[%s2181_s23 + $0x8] sm:$0xff] }
 0x36a   : > { %1251 = vmatpush.bf16.msra.mxu0 %v1860_v44 }
 0x375   : > { %1195 = vrot.lane.b32.xlu0 %v2259_v60, %s2037_s21 }
 0x37d   : > { %1125 = vrot.lane.b32.xlu0 %v2259_v60, %s2036_s20 }
 0x3b5   : > { %v962_v45 = vpop.xlane.xlu2 %961 }
 0x3b6   : > { %1928 = vrcp.f32 %v962_v45  ;;  %v974_v54 = vand.u32 2147483648, %v962_v45  ;;  %v972_v55 = vand.u32 2147483647, %v962_v45  ;;  %vm968_vm13 = vweird.f32 %v962_v45 }
 0x3b8   : > { %v975_v58 = vor.u32 1.1754944e-38, %v974_v54  ;;  %vm973_vm15 = vcmp.eq.f32.partialorder %v972_v55, 8.507059e+37 }
 0x3bc   : > { %v1929_v46 = vpop.eup %1928 }
 0x3bd   : > { %v964_v47 = vmul.f32 %v1929_v46, %v962_v45  ;;  %v1051_v48 = vpop.permute.xlu2 %1050  ;;  %vm969_vm12 = vweird.f32 %v1929_v46 }
 0x3be   : > { %v1056_v49 = vsel %vm984_vm11, %v1051_v48, 0  ;;  %vm970_vm14 = vmor %vm968_vm13, %vm969_vm12 }
 0x3bf   : > { %v965_v50 = vsub.f32 1.0, %v964_v47  ;;  %1065 = vmatpush.bf16.msrb.mxu2 %v1056_v49 }
 0x3c1   : > { %v966_v53 = vmul.f32 %v1929_v46, %v965_v50 }
 0x3c3   : > { %v967_v56 = vadd.f32 %v1929_v46, %v966_v53  ;;  %v1859_v53 = vld [vmem:[%s2181_s23] sm:$0xff] }
 0x3c4   : > { %v1033_v57 = vpop.xlane.xlu0 %1032  ;;  %1252 = vmatpush.bf16.msra.mxu0 %v1859_v53  ;;  %v1866_v53 = vld [vmem:[%s2208_s2 + $0x18] sm:$0xff] }
 0x3c5   : > { %1930 = vrcp.f32 %v1033_v57  ;;  %v971_v59 = vsel %vm970_vm14, %v1929_v46, %v967_v56  ;;  %v1045_v3 = vand.u32 2147483648, %v1033_v57  ;;  %v1043_v4 = vand.u32 2147483647, %v1033_v57  ;;  %1425 = vmatpush.bf16.msra.mxu3 %v1866_v53  ;;  %v1919_v53 = vld [vmem:[%s813_s7] ss:$0 sm:$0xff] }
 0x3c6   : > { %v976_v60 = vsel %vm973_vm15, %v975_v58, %v971_v59  ;;  %vm1039_vm1 = vweird.f32 %v1033_v57 }
 0x3c7   : > { %v977_v61 = vmul.f32 %v1921_v26, %v976_v60  ;;  %v1046_v6 = vor.u32 1.1754944e-38, %v1045_v3  ;;  %vm1044_vm3 = vcmp.eq.f32.partialorder %v1043_v4, 8.507059e+37  ;;  %v1913_v60 = vld [vmem:[%s2485_s5] ss:$0 sm:$0xff] }
 0x3c9   : > { %v978_v62 = vpack.c.bf16 %v977_v61, %v977_v61 }
 0x3cb   : > { %v1931_v63 = vpop.eup %1930  ;;  %1801 = vmatmul.msk.bf16.vlgmr.msra.gmra.mxu2 %vm953_vm10, %v978_v62 }
 0x3cc   : > { %v1035_v0 = vmul.f32 %v1931_v63, %v1033_v57  ;;  %vm1040_vm0 = vweird.f32 %v1931_v63 }
 0x3cd   : > { %vm1041_vm2 = vmor %vm1039_vm1, %vm1040_vm0 }
 0x3ce   : > { %v1036_v1 = vsub.f32 1.0, %v1035_v0 }
 0x3d0   : > { %v1037_v2 = vmul.f32 %v1931_v63, %v1036_v1 }
 0x3d2   : > { %v1038_v5 = vadd.f32 %v1931_v63, %v1037_v2 }
 0x3d4   : > { %v1178_v7 = vpop.xlane.xlu0 %1177  ;;  %v1042_v8 = vsel %vm1041_vm2, %v1931_v63, %v1038_v5  ;;  %v2039_v5 = vmov 32.0  }
 0x3d5   : > { %1932 = vrcp.f32 %v1178_v7  ;;  %v1047_v9 = vsel %vm1044_vm3, %v1046_v6, %v1042_v8  ;;  %v1190_v16 = vand.u32 2147483648, %v1178_v7  ;;  %v1188_v18 = vand.u32 2147483647, %v1178_v7 }
 0x3d6   : > { %v1048_v10 = vmul.f32 %v2282_v31, %v1047_v9  ;;  %vm1184_vm5 = vweird.f32 %v1178_v7 }
 0x3d7   : > { %v1191_v21 = vor.u32 1.1754944e-38, %v1190_v16  ;;  %vm1189_vm7 = vcmp.eq.f32.partialorder %v1188_v18, 8.507059e+37 }
 0x3d8   : > { %v1049_v11 = vpack.c.bf16 %v1048_v10, %v1048_v10 }
 0x3db   : > { %v1933_v12 = vpop.eup %1932  ;;  %1803 = vmatmul.msk.bf16.vlgmr.msrb.gmra.mxu2 %vm953_vm10, %v1049_v11 }
 0x3dc   : > { %v1180_v13 = vmul.f32 %v1933_v12, %v1178_v7  ;;  %v1108_v14 = vpop.xlane.xlu1 %1107  ;;  %vm1185_vm4 = vweird.f32 %v1933_v12 }
 0x3dd   : > { %1934 = vrcp.f32 %v1108_v14  ;;  %vm1186_vm6 = vmor %vm1184_vm5, %vm1185_vm4  ;;  %v1120_v27 = vand.u32 2147483648, %v1108_v14  ;;  %v1118_v30 = vand.u32 2147483647, %v1108_v14  ;;  %vm1114_vm13 = vweird.f32 %v1108_v14 }
 0x3de   : > { %v1181_v15 = vsub.f32 1.0, %v1180_v13  ;;  %1936 = vrcp.f32 %v2039_v5  ;;  %vm1417_vm4 = vcmask 523264  }
 0x3df   : > { %v1121_v34 = vor.u32 1.1754944e-38, %v1120_v27  ;;  %vm1119_vm15 = vcmp.eq.f32.partialorder %v1118_v30, 8.507059e+37 }
 0x3e0   : > { %v1182_v17 = vmul.f32 %v1933_v12, %v1181_v15 }
 0x3e2   : > { %v1183_v19 = vadd.f32 %v1933_v12, %v1182_v17 }
 0x3e3   : > { %v1935_v20 = vpop.eup %1934 }
 0x3e4   : > { %v1187_v22 = vsel %vm1186_vm6, %v1933_v12, %v1183_v19  ;;  %v1110_v23 = vmul.f32 %v1935_v20, %v1108_v14  ;;  %vm1115_vm12 = vweird.f32 %v1935_v20  ;;  %v1937_v6 = vpop.eup %1936 }
 0x3e5   : > { %v1192_v24 = vsel %vm1189_vm7, %v1191_v21, %v1187_v22  ;;  %vm1116_vm14 = vmor %vm1114_vm13, %vm1115_vm12  ;;  %v1270_v7 = vmul.f32 32.0, %v1937_v6 }
 0x3e6   : > { %v1193_v25 = vmul.f32 %v2288_v40, %v1192_v24  ;;  %v1111_v26 = vsub.f32 1.0, %v1110_v23  ;;  %v1861_v24 = vld [vmem:[%s2198_s8] sm:$0xff] }
 0x3e7   : > { %v1196_v28 = vpop.permute.xlu0 %1195  ;;  %v1271_v8 = vsub.f32 1.0, %v1270_v7 }
 0x3e8   : > { %v1112_v29 = vmul.f32 %v1935_v20, %v1111_v26  ;;  %v1201_v31 = vsel %vm984_vm11, %v1196_v28, 0  ;;  %v1194_v33 = vpack.c.bf16 %v1193_v25, %v1193_v25 }
 0x3e9   : > { %1210 = vmatpush.bf16.msra.mxu2 %v1201_v31  ;;  %v1272_v9 = vmul.f32 %v1937_v6, %v1271_v8 }
 0x3ea   : > { %v1113_v32 = vadd.f32 %v1935_v20, %v1112_v29 }
 0x3eb   : > { %v1273_v10 = vadd.f32 %v1937_v6, %v1272_v9 }
 0x3ec   : > { %1807 = vmatmul.msk.bf16.vlgmr.msra.gmra.mxu2 %vm953_vm10, %v1194_v33  ;;  %v1117_v35 = vsel %vm1116_vm14, %v1935_v20, %v1113_v32  ;;  %v1862_v20 = vld [vmem:[%s2198_s8 + $0x8] sm:$0xff]  ;;  %s2491_s8 = sld [smem:[#allocation16_spill]] (!%p1843_p5) }
 0x3ed   : > { %v1122_v36 = vsel %vm1119_vm15, %v1121_v34, %v1117_v35 }
 0x3ee   : > { %v1123_v37 = vmul.f32 %v2292_v43, %v1122_v36 }
 0x3ef   : > { %v1126_v38 = vpop.permute.xlu0 %1125 }
 0x3f0   : > { %v1131_v39 = vsel %vm984_vm11, %v1126_v38, 0  ;;  %v1124_v40 = vpack.c.bf16 %v1123_v37, %v1123_v37 }
 0x3f1   : > { %1140 = vmatpush.bf16.msrb.mxu1 %v1131_v39 }
 0x3f4   : > { %1805 = vmatmul.msk.bf16.vlgmr.msrb.gmra.mxu1 %vm953_vm10, %v1124_v40  ;;  %v1914_v40 = vld [vmem:[%s2486_s22] ss:$0 sm:$0xff] }
 0x3f5   : > { %1354 = vmatpush.bf16.msra.mxu1 %v1862_v20 }
 0x3f9   : > { %1355 = vmatpush.bf16.msra.mxu1 %v1861_v24 }
 0x44e   : > { %v997_v41 = vpop.f32.mrf.mxu2 }
 0x456   : > { %v999_v42 = vpop.f32.mrf.mxu2 }
 0x45e   : > { %v1067_v45 = vpop.f32.mrf.mxu2 }
 0x466   : > { %v1069_v46 = vpop.f32.mrf.mxu2 }
 0x46f   : > { %v1212_v47 = vpop.f32.mrf.mxu2 }
 0x470   : > { %v1907_v48 = vpack.i.bf16 %v1212_v47, %v1067_v45  ;;  %v1915_v45 = vld [vmem:[%s2487_s24] ss:$0 sm:$0xff] }
 0x471   : > { %v1142_v49 = vpop.f32.mrf.mxu1 }
 0x472   : > { %1908 = vrot.lane.b32.xlu2 %v1907_v48, %s2038_s28 }
 0x477   : > { %v1214_v43 = vpop.f32.mrf.mxu2 }
 0x479   : > { %v1144_v50 = vpop.f32.mrf.mxu1 }
 0x4cc   : > { %v1909_v54 = vpop.permute.xlu2 %1908 }
 0x4cd   : > { %v1911_v55 = vunpack.i.h.bf16 %v1909_v54  ;;  %v1910_v56 = vunpack.i.l.bf16 %v1909_v54  ;;  %v1865_v54 = vld [vmem:[%s2208_s2 + $0x10] sm:$0xff] }
 0x4ce   : > { %1426 = vmatpush.bf16.msra.mxu3 %v1865_v54 }
 0x4cf   : > { %v1075_v57 = vsel %vm932_vm9, %v997_v41, %v1910_v56  ;;  %v1220_v58 = vsel %vm932_vm9, %v1142_v49, %v1911_v55  ;;  %vm1274_vm9 = vweird.f32 %v1937_v6  ;;  %v1864_v55 = vld [vmem:[%s2208_s2 + $0x8] sm:$0xff]  ;;  %v1863_v56 = vld [vmem:[%s2208_s2] sm:$0xff] }
 0x4d0   : > { %v1225_v59 = vpack.c.bf16 %v1220_v58, %v1075_v57  ;;  %v1916_v57 = vld [vmem:[%s799_s10] ss:$0 sm:$0xff] }
 0x4d2   : > { %1816 = vmatmul.msk.bf16.vlgmr.msra.gmra.mxu0 %vm910_vm8, %v1225_v59  ;;  %1427 = vmatpush.bf16.msra.mxu3 %v1864_v55 }
 0x4d6   : > { %1428 = vmatpush.bf16.msra.mxu3 %v1863_v56 }
 0x54f   : > { %v1254_v61 = vpop.f32.mrf.mxu0 }
 0x550   : > { %v1255_v62 = vadd.f32 %v1913_v60, %v1254_v61 }
 0x552   : > { %v1259_v63 = vadd.f32 %v1255_v62, %v2243_v51  ;;  %v2323_v51 = vsel %vm1274_vm9, %v1937_v6, %v1273_v10 }
 0x554   : > { %v1263_v0 = vsel %vm910_vm8, %v1259_v63, 0.0 }
 0x555   : > { %1264 = vadd.xlane.f32.xlu0 %v1263_v0 }
 0x557   : > { %v1256_v1 = vpop.f32.mrf.mxu0 }
 0x558   : > { %v1257_v2 = vadd.f32 %v1913_v60, %v1256_v1 }
 0x55a   : > { %v1260_v3 = vadd.f32 %v1257_v2, %v2245_v52 }
 0x55c   : > { %v1266_v4 = vsel %vm910_vm8, %v1260_v3, 0.0 }
 0x55d   : > { %1267 = vadd.xlane.f32.xlu2 %v1266_v4 }
 0x5c8   : > { %v1265_v11 = vpop.xlane.xlu0 %1264 }
 0x5c9   : > { %v1276_v12 = vmul.f32 %v2323_v51, %v1265_v11 }
 0x5cb   : > { %v1278_v13 = vsub.f32 %v1259_v63, %v1276_v12 }
 0x5cd   : > { %v1280_v52 = vmul.f32 %v1278_v13, %v1278_v13 }
 0x5cf   : > { %v1282_v14 = vsel %vm910_vm8, %v1280_v52, 0.0 }
 0x5d0   : > { %v1268_v15 = vpop.xlane.xlu2 %1267  ;;  %1283 = vadd.xlane.f32.xlu1 %v1282_v14 }
 0x5d1   : > { %v1277_v16 = vmul.f32 %v2323_v51, %v1268_v15 }
 0x5d3   : > { %v1279_v17 = vsub.f32 %v1260_v3, %v1277_v16  ;;  %v1917_v16 = vld [vmem:[%s807_s3] ss:$0 sm:$0xff] }
 0x5d5   : > { %v1281_v18 = vmul.f32 %v1279_v17, %v1279_v17 }
 0x5d7   : > { %v1285_v19 = vsel %vm910_vm8, %v1281_v18, 0.0 }
 0x5d8   : > { %1286 = vadd.xlane.f32.xlu1 %v1285_v19 }
 0x643   : > { %v1284_v21 = vpop.xlane.xlu1 %1283 }
 0x644   : > { %v1288_v22 = vmul.f32 %v1284_v21, %v2323_v51 }
 0x646   : > { %v1290_v23 = vadd.f32 1e-12, %v1288_v22 }
 0x648   : > { %1938 = vrsqrt.f32 %v1290_v23  ;;  %vm1298_vm11 = vweird.f32 %v1290_v23 }
 0x64b   : > { %v1287_v25 = vpop.xlane.xlu1 %1286 }
 0x64c   : > { %v1289_v26 = vmul.f32 %v1287_v25, %v2323_v51 }
 0x64e   : > { %v1939_v27 = vpop.eup %1938  ;;  %v1291_v28 = vadd.f32 1e-12, %v1289_v26 }
 0x64f   : > { %v1293_v29 = vmul.f32 %v1939_v27, %v1290_v23  ;;  %vm1299_vm10 = vweird.f32 %v1939_v27 }
 0x650   : > { %1940 = vrsqrt.f32 %v1291_v28  ;;  %vm1300_vm0 = vmor %vm1298_vm11, %vm1299_vm10  ;;  %vm1308_vm2 = vweird.f32 %v1291_v28 }
 0x651   : > { %v1294_v30 = vmul.f32 %v1939_v27, %v1293_v29 }
 0x653   : > { %v1295_v31 = vmul.f32 0.5, %v1294_v30 }
 0x655   : > { %v1296_v32 = vsub.f32 1.5, %v1295_v31 }
 0x656   : > { %v1941_v33 = vpop.eup %1940 }
 0x657   : > { %v1297_v34 = vmul.f32 %v1939_v27, %v1296_v32  ;;  %v1303_v35 = vmul.f32 %v1941_v33, %v1291_v28  ;;  %vm1309_vm1 = vweird.f32 %v1941_v33 }
 0x658   : > { %vm1310_vm3 = vmor %vm1308_vm2, %vm1309_vm1 }
 0x659   : > { %v1304_v36 = vmul.f32 %v1941_v33, %v1303_v35  ;;  %v1301_v37 = vsel %vm1300_vm0, %v1939_v27, %v1297_v34 }
 0x65a   : > { %v1312_v41 = vmul.f32 %v1301_v37, %v1278_v13 }
 0x65b   : > { %v1305_v38 = vmul.f32 0.5, %v1304_v36 }
 0x65c   : > { %v1317_v46 = vmul.f32 %v1914_v40, %v1312_v41 }
 0x65d   : > { %v1306_v39 = vsub.f32 1.5, %v1305_v38 }
 0x65e   : > { %v1322_v49 = vadd.f32 %v1915_v45, %v1317_v46 }
 0x65f   : > { %v1307_v42 = vmul.f32 %v1941_v33, %v1306_v39 }
 0x661   : > { %v1311_v44 = vsel %vm1310_vm3, %v1941_v33, %v1307_v42 }
 0x662   : > { %v1313_v47 = vmul.f32 %v1311_v44, %v1279_v17 }
 0x664   : > { %v1318_v48 = vmul.f32 %v1914_v40, %v1313_v47 }
 0x666   : > { %v1323_v43 = vadd.f32 %v1915_v45, %v1318_v48 }
 0x668   : > { %v1328_v50 = vpack.c.bf16 %v1323_v43, %v1322_v49 }
 0x66a   : > { %1825 = vmatmul.msk.bf16.vlgmr.msra.gmra.mxu1 %vm910_vm8, %v1328_v50 }
 0x6e7   : > { %v1357_v58 = vpop.f32.mrf.mxu1 }
 0x6e8   : > { %v1358_v59 = vadd.f32 %v1916_v57, %v1357_v58 }
 0x6ea   : > { %v1364_v60 = vmul.f32 0.044715, %v1358_v59  ;;  %v1362_v11 = vmul.f32 0.5, %v1358_v59 }
 0x6ec   : > { %v1366_v61 = vmul.f32 %v1364_v60, %v1358_v59 }
 0x6ee   : > { %v1368_v62 = vmul.f32 %v1366_v61, %v1358_v59 }
 0x6ef   : > { %v1359_v63 = vpop.f32.mrf.mxu1 }
 0x6f0   : > { %v1370_v0 = vadd.f32 %v1368_v62, %v1358_v59  ;;  %v1360_v1 = vadd.f32 %v1916_v57, %v1359_v63 }
 0x6f2   : > { %v1365_v2 = vmul.f32 0.044715, %v1360_v1  ;;  %v1372_v3 = vmul.f32 0.7978846, %v1370_v0  ;;  %v1363_v12 = vmul.f32 0.5, %v1360_v1 }
 0x6f4   : > { %v1367_v4 = vmul.f32 %v1365_v2, %v1360_v1  ;;  %1942 = vtanh.f32 %v1372_v3 }
 0x6f6   : > { %v1369_v5 = vmul.f32 %v1367_v4, %v1360_v1 }
 0x6f8   : > { %v1371_v6 = vadd.f32 %v1369_v5, %v1360_v1 }
 0x6fa   : > { %v1373_v7 = vmul.f32 0.7978846, %v1371_v6  ;;  %v1943_v8 = vpop.eup %1942 }
 0x6fb   : > { %v1376_v9 = vadd.f32 1.0, %v1943_v8 }
 0x6fc   : > { %1944 = vtanh.f32 %v1373_v7 }
 0x6fd   : > { %v1378_v52 = vmul.f32 %v1376_v9, %v1362_v11 }
 0x702   : > { %v1945_v10 = vpop.eup %1944 }
 0x703   : > { %v1377_v13 = vadd.f32 1.0, %v1945_v10 }
 0x705   : > { %v1379_v14 = vmul.f32 %v1377_v13, %v1363_v12 }
 0x707   : > { %v1388_v15 = vpack.c.bf16 %v1379_v14, %v1378_v52 }
 0x709   : > { %1842 = vmatmul.msk.bf16.vlgmr.msra.gmra.mxu3 %vm1417_vm4, %v1388_v15 }
 0x78c   : > { %v1430_v17 = vpop.f32.mrf.mxu3 }
 0x78d   : > { %v1431_v18 = vadd.f32 %v1917_v16, %v1430_v17 }
 0x78f   : > { %v1435_v19 = vadd.f32 %v1431_v18, %v1322_v49 }
 0x791   : > { %v1439_v20 = vsel %vm910_vm8, %v1435_v19, 0.0 }
 0x792   : > { %1440 = vadd.xlane.f32.xlu1 %v1439_v20 }
 0x794   : > { %v1432_v21 = vpop.f32.mrf.mxu3 }
 0x795   : > { %v1433_v22 = vadd.f32 %v1917_v16, %v1432_v21 }
 0x797   : > { %v1436_v23 = vadd.f32 %v1433_v22, %v1323_v43  ;;  %v1918_v43 = vld [vmem:[%s810_s0] ss:$0 sm:$0xff]  ;;  %s2488_s0 = sld [smem:[#allocation13_spill]] (!%p1843_p5) }
 0x799   : > { %v1442_v24 = vsel %vm910_vm8, %v1436_v23, 0.0 }
 0x79a   : > { %1443 = vadd.xlane.f32.xlu0 %v1442_v24 }
 0x805   : > { %v1441_v25 = vpop.xlane.xlu1 %1440 }
 0x806   : > { %v1445_v26 = vmul.f32 %v1441_v25, %v2323_v51 }
 0x808   : > { %v1447_v27 = vsub.f32 %v1435_v19, %v1445_v26 }
 0x80a   : > { %v1449_v28 = vmul.f32 %v1447_v27, %v1447_v27 }
 0x80c   : > { %v1451_v29 = vsel %vm910_vm8, %v1449_v28, 0.0 }
 0x80d   : > { %v1444_v30 = vpop.xlane.xlu0 %1443  ;;  %1452 = vadd.xlane.f32.xlu2 %v1451_v29 }
 0x80e   : > { %v1446_v31 = vmul.f32 %v1444_v30, %v2323_v51 }
 0x810   : > { %v1448_v32 = vsub.f32 %v1436_v23, %v1446_v31 }
 0x812   : > { %v1450_v33 = vmul.f32 %v1448_v32, %v1448_v32 }
 0x814   : > { %v1454_v34 = vsel %vm910_vm8, %v1450_v33, 0.0 }
 0x815   : > { %1455 = vadd.xlane.f32.xlu1 %v1454_v34 }
 0x880   : > { %v1453_v35 = vpop.xlane.xlu2 %1452 }
 0x881   : > { %v1457_v36 = vmul.f32 %v1453_v35, %v2323_v51 }
 0x883   : > { %v1459_v37 = vadd.f32 1e-12, %v1457_v36 }
 0x885   : > { %1946 = vrsqrt.f32 %v1459_v37  ;;  %vm1467_vm6 = vweird.f32 %v1459_v37 }
 0x888   : > { %v1456_v38 = vpop.xlane.xlu1 %1455 }
 0x889   : > { %v1458_v39 = vmul.f32 %v1456_v38, %v2323_v51 }
 0x88b   : > { %v1947_v40 = vpop.eup %1946  ;;  %v1460_v41 = vadd.f32 1e-12, %v1458_v39 }
 0x88c   : > { %v1462_v42 = vmul.f32 %v1947_v40, %v1459_v37  ;;  %vm1468_vm5 = vweird.f32 %v1947_v40 }
 0x88d   : > { %1948 = vrsqrt.f32 %v1460_v41  ;;  %vm1469_vm7 = vmor %vm1467_vm6, %vm1468_vm5  ;;  %vm1477_vm13 = vweird.f32 %v1460_v41 }
 0x88e   : > { %v1463_v44 = vmul.f32 %v1947_v40, %v1462_v42 }
 0x890   : > { %v1464_v45 = vmul.f32 0.5, %v1463_v44 }
 0x892   : > { %v1465_v46 = vsub.f32 1.5, %v1464_v45 }
 0x893   : > { %v1949_v47 = vpop.eup %1948 }
 0x894   : > { %v1466_v48 = vmul.f32 %v1947_v40, %v1465_v46  ;;  %v1472_v49 = vmul.f32 %v1949_v47, %v1460_v41  ;;  %vm1478_vm12 = vweird.f32 %v1949_v47 }
 0x895   : > { %vm1479_vm14 = vmor %vm1477_vm13, %vm1478_vm12 }
 0x896   : > { %v1470_v51 = vsel %vm1469_vm7, %v1947_v40, %v1466_v48  ;;  %v1473_v50 = vmul.f32 %v1949_v47, %v1472_v49 }
 0x897   : > { %v1481_v54 = vmul.f32 %v1470_v51, %v1447_v27 }
 0x898   : > { %v1474_v55 = vmul.f32 0.5, %v1473_v50 }
 0x899   : > { %v1486_v56 = vmul.f32 %v1918_v43, %v1481_v54 }
 0x89a   : > { %v1475_v57 = vsub.f32 1.5, %v1474_v55 }
 0x89b   : > { %v1491_v58 = vadd.f32 %v1919_v53, %v1486_v56 }
 0x89c   : > { %v1476_v59 = vmul.f32 %v1949_v47, %v1475_v57 }
 0x89d   : > { %1493 = vst.msk [vmem:[#allocation2] sm:$0xff] %vm910_vm8, %v1491_v58 }
 0x89e   : > { %v1480_v60 = vsel %vm1479_vm14, %v1949_v47, %v1476_v59 }
 0x89f   : > { %v1482_v61 = vmul.f32 %v1480_v60, %v1448_v32 }
 0x8a1   : > { %v1487_v62 = vmul.f32 %v1918_v43, %v1482_v61  ;;  %1498 = sbr.rel (%p1843_p5) target bundleno = 2882 (0xb42), region = 108 }
 0x8a3   : > { %v1492_v63 = vadd.f32 %v1919_v53, %v1487_v62 }
 0x8a5   : > { %1494 = vst.msk [vmem:[#allocation2 + $0x8] sm:$0xff] %vm910_vm8, %v1492_v63 }
 0x8a6   : > { %v1506_v0 = vld [vmem:[%s2488_s0 + $0x10] sm:$0xff]  ;;  %v1507_v1 = vld [vmem:[%s2488_s0 + $0x18] sm:$0xff]  ;;  %v1504_v2 = vld [vmem:[%s2488_s0] sm:$0xff]  ;;  %v1500_v3 = vrot.slane %v1492_v63, 7  ;;  %vm1502_vm15 = vcmask 1040384   ;;  %vm1559_vm9 = vcmask 9216   ;;  %v1573_v32 = vlaneseq }
 0x8a7   : > { %v1510_v4 = vpack.c.bf16 %v1507_v1, %v1506_v0  ;;  %v1505_v5 = vld [vmem:[%s2488_s0 + $0x8] sm:$0xff]  ;;  %v1534_v9 = vld [vmem:[%s2489_s29 + $0x10] sm:$0xff]  ;;  %v1535_v10 = vld [vmem:[%s2489_s29 + $0x18] sm:$0xff]  ;;  %v2040_v26 = vmov 0   ;;  %v2041_v38 = vmov 0.0   ;;  %vm1587_vm10 = vcmask 1041408  }
 0x8a8   : > { %v1509_v6 = vpack.c.bf16 %v1505_v5, %v1504_v2  ;;  %v1503_v7 = vsel %vm1502_vm15, %v1491_v58, %v1500_v3  ;;  %v1538_v11 = vpack.c.bf16 %v1535_v10, %v1534_v9  ;;  %v1532_v12 = vld [vmem:[%s2489_s29] sm:$0xff]  ;;  %v1533_v13 = vld [vmem:[%s2489_s29 + $0x8] sm:$0xff]  ;;  %1950 = vset.pattern.permute.xlu1 %v2040_v26  ;;  %1951 = vset.pattern.permute.xlu0 %v2040_v26  ;;  %v1574_v34 = vand.u32 127, %v1573_v32 }
 0x8a9   : > { %1524 = vmatpush.bf16.msra.mxu0 %v1510_v4  ;;  %v1508_v8 = vpack.c.bf16 %v1503_v7, %v1503_v7  ;;  %v1537_v52 = vpack.c.bf16 %v1533_v13, %v1532_v12  ;;  %v1952_v14 = vld [vmem:[%s2490_s26] ss:$0 sm:$0xff]  ;;  %vm1596_vm11 = vcmask 0  }
 0x8aa   : > { %1552 = vmatpush.bf16.msra.mxu1 %v1538_v11  ;;  %v1953_v20 = vld [vmem:[%s2491_s8] ss:$0 sm:$0xff] }
 0x8ab   : > { %v1575_v25 = vld [vmem:[%s2492_s6] sm:$0x3] }
 0x8ac   : > { %1577 = vperm.xlu1 %1950, %v1575_v25  }
 0x8ad   : > { %1525 = vmatpush.bf16.msra.mxu0 %v1509_v6 }
 0x8ae   : > { %1553 = vmatpush.bf16.msra.mxu1 %v1537_v52 }
 0x8b0   : > { %1844 = vmatmul.msk.bf16.vlgmr.msra.gmra.mxu0 %vm910_vm8, %v1508_v8 }
 0x91e   : > { %v1578_v35 = vpop.permute.xlu1 %1577 }
 0x92d   : > { %v1527_v15 = vpop.f32.mrf.mxu0 }
 0x92e   : > { %v1528_v16 = vadd.f32 %v1952_v14, %v1527_v15 }
 0x930   : > { %1954 = vtanh.f32 %v1528_v16 }
 0x935   : > { %v1529_v17 = vpop.f32.mrf.mxu0 }
 0x936   : > { %v1955_v18 = vpop.eup %1954 }
 0x937   : > { %v1536_v19 = vpack.c.bf16 %v1955_v18, %v1955_v18 }
 0x939   : > { %1845 = vmatmul.msk.bf16.vlgmr.msra.gmra.mxu1 %vm910_vm8, %v1536_v19  ;;  %vm1579_vm8 = vcmp.eq.s32.totalorder %v1574_v34, %v1578_v35 }
 0x93a   : > { %v1846_v39 = vsel %vm1579_vm8, 1.0, %v2041_v38 }
 0x9b6   : > { %v1555_v21 = vpop.f32.mrf.mxu1 }
 0x9b7   : > { %v1556_v22 = vadd.f32 %v1953_v20, %v1555_v21 }
 0x9b9   : > { %v1561_v23 = vsel %vm1559_vm9, %v1556_v22, -inf  ;;  %1560 = vst.msk [vmem:[#allocation3] sm:$0x3] %vm1559_vm9, %v1556_v22 }
 0x9ba   : > { %1562 = vmax.xlane.f32.xlu0 %v1561_v23 }
 0x9be   : > { %v1557_v24 = vpop.f32.mrf.mxu1 }
 0xa2d   : > { %v1563_v27 = vpop.xlane.xlu0 %1562 }
 0xa2e   : > { %v1564_v28 = vsub.f32 %v1556_v22, %v1563_v27 }
 0xa30   : > { %v1565_v29 = vmul.f32 1.442695, %v1564_v28 }
 0xa32   : > { %1956 = vpow2.f32 %v1565_v29 }
 0xa38   : > { %v1957_v30 = vpop.eup %1956 }
 0xa39   : > { %v1567_v31 = vsel %vm1559_vm9, %v1957_v30, 0.0 }
 0xa3a   : > { %1568 = vadd.xlane.f32.xlu0 %v1567_v31 }
 0xaad   : > { %v1569_v33 = vpop.xlane.xlu0 %1568 }
 0xaae   : > { %1958 = vlog2.f32 %v1569_v33 }
 0xab4   : > { %v1959_v36 = vpop.eup %1958 }
 0xab5   : > { %v1571_v37 = vmul.f32 0.6931472, %v1959_v36 }
 0xab7   : > { %v1572_v40 = vsub.f32 %v1564_v28, %v1571_v37 }
 0xab9   : > { %v1582_v41 = vmul.f32 %v1846_v39, %v1572_v40 }
 0xabb   : > { %v1583_v42 = vsel %vm1559_vm9, %v1582_v41, 0.0 }
 0xabc   : > { %1584 = vadd.xlane.f32.xlu1 %v1583_v42 }
 0xb2f   : > { %v1585_v44 = vpop.xlane.xlu1 %1584 }
 0xb30   : > { %v1586_v45 = vsub.f32 0.0, %v1585_v44 }
 0xb32   : > { %v1588_v46 = vsel %vm1587_vm10, %v1586_v45, 0.0 }
 0xb33   : > { %v1589_v47 = vrot.slane %v1588_v46, 4 }
 0xb35   : > { %v1590_v48 = vadd.f32 %v1589_v47, %v1588_v46 }
 0xb37   : > { %v1591_v49 = vrot.slane %v1590_v48, 2 }
 0xb39   : > { %v1592_v43 = vadd.f32 %v1591_v49, %v1590_v48 }
 0xb3b   : > { %v1593_v51 = vrot.slane %v1592_v43, 1 }
 0xb3d   : > { %v1594_v50 = vadd.f32 %v1593_v51, %v1592_v43 }
 0xb3f   : > { %v1595_v53 = vmul.f32 0.5, %v1594_v50 }
 0xb41   : > { %1597 = vst.msk [vmem:[#allocation5] sm:$0x1] %vm1596_vm11, %v1595_v53 }
 0xb42 PF: > { %p1875_p6 = scmp.eq.s32.totalorder %s2160_s25, 1  ;;  %s2042_s30 = smov [#allocation3]  }
 0xb43   : > { %s1604_s24 = sshll.u32 %s2042_s30, 4  ;;  %s2493_s2 = sld [smem:[#allocation20_spill]]  ;;  %s1605_s24 = int_to_ptr.vmem [resolvable:$true] %s1604_s24 }
 0xb44   : > { %s2494_s27 = sld [smem:[#allocation21_spill]]  ;;  %s2043_s26 = smov [#allocation5]  }
 0xb45   : > { %s1616_s4 = sshll.u32 %s2043_s26, 4  ;;  %s1617_s4 = int_to_ptr.vmem [resolvable:$true] %s1616_s4 }
 0xb49   : > { %s1606_s3 = sshll.u32 %s2493_s2, 4  ;;  %s1607_s3 = int_to_ptr.hbm [resolvable:$true] %s1606_s3 }
 0xb4a   : > { %1868 = dma.vmem_to_hbm [thread:$0]  (%p1875_p6), %s1605_s24, 32, %s1607_s3, [#allocation4]  }
 0xb4b   : > { %s1618_s7 = sshll.u32 %s2494_s27, 4  ;;  %s1619_s7 = int_to_ptr.hbm [resolvable:$true] %s1618_s7 }
 0xb4c   : > { %1870 = dma.vmem_to_hbm [thread:$0]  (%p1875_p6), %s1617_s4, 16, %s1619_s7, [#allocation6]  }
 0xb4d   : > { %2021 = dma.done.wait (%p1875_p6), [#allocation4], 32  }
 0xb4e   : > { %2023 = vsyncadd (%p1875_p6), [#allocation4], 4294967264 }
 0xb4f   : > { %2025 = dma.done.wait (%p1875_p6), [#allocation6], 16  }
 0xb50   : > { %2027 = vsyncadd (%p1875_p6), [#allocation6], 4294967280 }
 0xb51 PF: > { %s2495_s5 = sld [smem:[#allocation9_spill]] }
 0xb57   : > { %s34_s2 = sadd.s32 1, %s2495_s5  }
 0xb58   : > { %p31_p7 = scmp.ge.s32.totalorder %s34_s2, 4  }
 0xb5a   :  { %33 = sbr.rel (!%p31_p7) target bundleno = 15 (0xf), region = 176 }
 0xb5f   :  { %1637 = vsyncpa [#allocation4], 1 }
 0xb60   :  { %1639 = vsyncpa [#allocation4 + $0x1], 1 }
 0xb61   :  { %1640 = vsyncpa [#allocation6], 1 }

</bundles_post_ra>
